<compile_context>
chip_gen: v6e
topology: v6e:2x2x1
jax: 0.10.0
libtpu: 0.0.40
codegen_flags: <defaults>
</compile_context>

<pallas_src>
import functools

import jax
import jax.numpy as jnp
from jax import lax
from jax.experimental import pallas as pl
from jax.experimental.pallas import tpu as pltpu

_LANE = 128


def _round_up(n, m):
    return ((n + m - 1) // m) * m


def _num_tensorcores():
    """Best-effort TC-per-chip detection (v7x has 2 TCs; v5e/v6e have 1)."""
    try:
        kind = jax.devices()[0].device_kind.lower()
        if "v7" in kind or "7x" in kind:
            return 2
    except Exception:  # pragma: no cover - defensive
        pass
    return 1


def _actor_head_kernel(x_ref, w1_ref, b1_ref, w2_ref, b2_ref, wh_ref, bh_ref,
                       out_ref, *, max_action, output_dim):
    # fc[0]: Linear(input, hidden) + ReLU.  x arrives f32 with its real feature width;
    # cast to bf16 only for the MXU operands (f32 accumulation).
    x = x_ref[...].astype(jnp.bfloat16)
    h1 = jnp.dot(x, w1_ref[...], preferred_element_type=jnp.float32)
    h1 = jnp.maximum(h1 + b1_ref[...], 0.0)

    # fc[2]: Dropout(p=0.4) -> identity in eval mode.

    # fc[3]: Linear(hidden, hidden) + ReLU
    h2 = jnp.dot(h1.astype(jnp.bfloat16), w2_ref[...],
                 preferred_element_type=jnp.float32)
    h2 = jnp.maximum(h2 + b2_ref[...], 0.0)

    # fused mu/sigma head: single lane-dense matmul into one 128-lane slab.
    head = jnp.dot(h2.astype(jnp.bfloat16), wh_ref[...],
                   preferred_element_type=jnp.float32) + bh_ref[...]

    # per-lane select: cols [0, output_dim) -> mu = tanh(.)*max_action,
    #                  cols [output_dim, 2*output_dim) -> sigma = softplus(.)
    col = lax.broadcasted_iota(jnp.int32, head.shape, 1)
    mu_val = jnp.tanh(head) * max_action
    sig_val = jnp.maximum(head, 0.0) + jnp.log1p(jnp.exp(-jnp.abs(head)))
    out_ref[...] = jnp.where(col < output_dim, mu_val, sig_val)


def prepare_kernel_params(params, input_dim, hidden_dim, output_dim):
    """One-time prep: pad hidden/head dims to 128 lanes, cast MXU weights to bf16,
    fuse mu/sigma into one packed head (cols [0:out)=mu, [out:2*out)=sigma)."""
    hid_pad = _round_up(hidden_dim, _LANE)
    out_w = _round_up(2 * output_dim, _LANE)

    def pad_w(w, rows, cols):
        return jnp.zeros((rows, cols), jnp.float32).at[:w.shape[0], :w.shape[1]].set(w)

    def pad_b(b, cols):
        b = b.reshape(1, -1)
        return jnp.zeros((1, cols), jnp.float32).at[:, :b.shape[1]].set(b)

    wh = jnp.zeros((hid_pad, out_w), jnp.float32)
    wh = wh.at[:hidden_dim, :output_dim].set(params["wmu"])
    wh = wh.at[:hidden_dim, output_dim:2 * output_dim].set(params["wsig"])
    bh = jnp.zeros((1, out_w), jnp.float32)
    bh = bh.at[:, :output_dim].set(params["bmu"].reshape(1, -1))
    bh = bh.at[:, output_dim:2 * output_dim].set(params["bsig"].reshape(1, -1))

    return {
        # first-layer weight keeps its real (unpadded) input dim: the x block's last dim
        # equals the full array dim, so no 128-padding of K is needed.
        "w1": pad_w(params["w1"], input_dim, hid_pad).astype(jnp.bfloat16),
        "b1": pad_b(params["b1"], hid_pad),
        "w2": pad_w(params["w2"], hid_pad, hid_pad).astype(jnp.bfloat16),
        "b2": pad_b(params["b2"], hid_pad),
        "wh": wh.astype(jnp.bfloat16),
        "bh": bh,
        "dims": (input_dim, hidden_dim, output_dim, hid_pad, out_w),
    }


def continue_actor_head(x, kparams, *, max_action=2.0, max_block_b=1024):
    """x: [B, input_dim] float32. kparams: prepare_kernel_params output. Returns (mu, sigma)."""
    input_dim, hidden_dim, output_dim, hid_pad, out_w = kparams["dims"]
    B = x.shape[0]

    # Generation-aware batch tiling: one step per TensorCore when the batch fits, capped so
    # double-buffered x/out tiles stay far below v7x's 64 MiB VMEM (tb=1024 -> ~1.6 MiB).
    n_tc = _num_tensorcores()
    tb = _round_up(-(-B // n_tc), 16)          # ceil(B / n_tc), rounded to bf16 sublane pack
    tb = min(tb, _round_up(max_block_b, 16))
    b_pad = _round_up(B, tb)
    grid = (b_pad // tb,)

    # batch-row padding only (no feature padding, no wrapper-side cast)
    xp = x if b_pad == B else jnp.pad(x, ((0, b_pad - B), (0, 0)))

    def resident_spec(shape):
        # same block index every grid step -> weights DMA'd once, stay resident in VMEM
        return pl.BlockSpec(shape, lambda i: (0, 0))

    # advisory cost estimate so XLA schedules neighbors sensibly around this small call
    flops = 2 * b_pad * (input_dim * hid_pad + hid_pad * hid_pad + hid_pad * out_w)
    transcendentals = 3 * b_pad * out_w  # tanh + exp + log1p (both branches computed)
    bytes_accessed = (b_pad * input_dim * 4
                      + sum(int(kparams[k].size) * kparams[k].dtype.itemsize
                            for k in ("w1", "b1", "w2", "b2", "wh", "bh"))
                      + b_pad * out_w * 4)

    kernel = functools.partial(_actor_head_kernel, max_action=max_action,
                               output_dim=output_dim)

    out = pl.pallas_call(
        kernel,
        out_shape=jax.ShapeDtypeStruct((b_pad, out_w), jnp.float32),
        grid=grid,
        in_specs=[
            pl.BlockSpec((tb, input_dim), lambda i: (i, 0)),
            resident_spec(kparams["w1"].shape), resident_spec(kparams["b1"].shape),
            resident_spec(kparams["w2"].shape), resident_spec(kparams["b2"].shape),
            resident_spec(kparams["wh"].shape), resident_spec(kparams["bh"].shape),
        ],
        out_specs=pl.BlockSpec((tb, out_w), lambda i: (i, 0)),
        compiler_params=pltpu.CompilerParams(dimension_semantics=("parallel",)),
        cost_estimate=pl.CostEstimate(flops=flops, transcendentals=transcendentals,
                                      bytes_accessed=bytes_accessed),
    )(xp, kparams["w1"], kparams["b1"], kparams["w2"], kparams["b2"],
      kparams["wh"], kparams["bh"])

    mu = out[:B, :output_dim]
    sigma = out[:B, output_dim:2 * output_dim]
    return mu, sigma


def init_params(key, input_dim, hidden_dim, output_dim):
    ks = jax.random.split(key, 8)
    scale = 0.1
    # Weights stored as [in, out] (PyTorch Linear weight transposed).
    return {
        "w1":   scale * jax.random.normal(ks[0], (input_dim, hidden_dim), jnp.float32),
        "b1":   scale * jax.random.normal(ks[1], (hidden_dim,), jnp.float32),
        "w2":   scale * jax.random.normal(ks[2], (hidden_dim, hidden_dim), jnp.float32),
        "b2":   scale * jax.random.normal(ks[3], (hidden_dim,), jnp.float32),
        "wmu":  scale * jax.random.normal(ks[4], (hidden_dim, output_dim), jnp.float32),
        "bmu":  scale * jax.random.normal(ks[5], (output_dim,), jnp.float32),
        "wsig": scale * jax.random.normal(ks[6], (hidden_dim, output_dim), jnp.float32),
        "bsig": scale * jax.random.normal(ks[7], (output_dim,), jnp.float32),
    }


def _reference(x, p, max_action):
    # matches the kernel's MXU precision: bf16 operands, f32 accumulation
    def mm(a, w):
        return jnp.dot(a.astype(jnp.bfloat16), w.astype(jnp.bfloat16),
                       preferred_element_type=jnp.float32)
    h1 = jnp.maximum(mm(x, p["w1"]) + p["b1"], 0.0)
    h2 = jnp.maximum(mm(h1, p["w2"]) + p["b2"], 0.0)
    mu = jnp.tanh(mm(h2, p["wmu"]) + p["bmu"]) * max_action
    sigma = jax.nn.softplus(mm(h2, p["wsig"]) + p["bsig"])
    return mu, sigma


if __name__ == "__main__":
    key = jax.random.PRNGKey(0)
    k_x, k_p = jax.random.split(key)

    batch, input_dim, hidden_dim, output_dim = 256, 16, 32, 8
    max_action = 2.0

    x = jax.random.normal(k_x, (batch, input_dim), jnp.float32)
    raw_params = init_params(k_p, input_dim, hidden_dim, output_dim)
    kparams = prepare_kernel_params(raw_params, input_dim, hidden_dim, output_dim)

    mu, sigma = continue_actor_head(x, kparams, max_action=max_action)
    jax.block_until_ready((mu, sigma))

    mu_ref, sigma_ref = _reference(x, raw_params, max_action)
    assert mu.shape == (batch, output_dim) and sigma.shape == (batch, output_dim)
    assert jnp.allclose(mu, mu_ref, atol=5e-3, rtol=5e-3), \
        float(jnp.max(jnp.abs(mu - mu_ref)))
    assert jnp.allclose(sigma, sigma_ref, atol=5e-3, rtol=5e-3), \
        float(jnp.max(jnp.abs(sigma - sigma_ref)))
    assert bool(jnp.all(sigma > 0))

    print("KERNEL_OK")
</pallas_src>

<mosaic_0001>
module attributes {stable_mosaic.version = 11 : i64} {
  func.func @_actor_head_kernel(%arg0: i32, %arg1: memref<256x16xf32, #tpu.memory_space<vmem>>, %arg2: memref<16x128xbf16, #tpu.memory_space<vmem>>, %arg3: memref<1x128xf32, #tpu.memory_space<vmem>>, %arg4: memref<128x128xbf16, #tpu.memory_space<vmem>>, %arg5: memref<1x128xf32, #tpu.memory_space<vmem>>, %arg6: memref<128x128xbf16, #tpu.memory_space<vmem>>, %arg7: memref<1x128xf32, #tpu.memory_space<vmem>>, %arg8: memref<256x128xf32, #tpu.memory_space<vmem>>) attributes {dimension_semantics = [#tpu.dimension_semantics<parallel>], iteration_bounds = array<i64: 1>, scalar_prefetch = 0 : i64, scratch_operands = 0 : i64, tpu.core_type = #tpu.core_type<tc>, window_params = [{transform_indices = @transform_0, window_bounds = array<i64: 256, 16>}, {pipeline_mode = #tpu.pipeline_mode<synchronous>, transform_indices = @transform_1, window_bounds = array<i64: 16, 128>}, {pipeline_mode = #tpu.pipeline_mode<synchronous>, transform_indices = @transform_2, window_bounds = array<i64: 1, 128>}, {pipeline_mode = #tpu.pipeline_mode<synchronous>, transform_indices = @transform_3, window_bounds = array<i64: 128, 128>}, {pipeline_mode = #tpu.pipeline_mode<synchronous>, transform_indices = @transform_4, window_bounds = array<i64: 1, 128>}, {pipeline_mode = #tpu.pipeline_mode<synchronous>, transform_indices = @transform_5, window_bounds = array<i64: 128, 128>}, {pipeline_mode = #tpu.pipeline_mode<synchronous>, transform_indices = @transform_6, window_bounds = array<i64: 1, 128>}, {transform_indices = @transform_7, window_bounds = array<i64: 256, 128>}]} {
    %c0 = arith.constant 0 : index
    %c0_0 = arith.constant 0 : index
    %0 = vector.load %arg1[%c0, %c0_0] : memref<256x16xf32, #tpu.memory_space<vmem>>, vector<256x16xf32>
    %1 = arith.truncf %0 : vector<256x16xf32> to vector<256x16xbf16>
    %c0_1 = arith.constant 0 : index
    %c0_2 = arith.constant 0 : index
    %2 = vector.load %arg2[%c0_1, %c0_2] : memref<16x128xbf16, #tpu.memory_space<vmem>>, vector<16x128xbf16>
    %cst = arith.constant dense<0.000000e+00> : vector<256x128xf32>
    %3 = tpu.matmul %1, %2, %cst {dimension_numbers = #tpu.dot_dimension_numbers<[1], [0], [0], [1], [0, 0, 1, 1], [], []>} : vector<256x16xbf16>, vector<16x128xbf16>, vector<256x128xf32> -> vector<256x128xf32>
    %c0_3 = arith.constant 0 : index
    %c0_4 = arith.constant 0 : index
    %4 = vector.load %arg3[%c0_3, %c0_4] : memref<1x128xf32, #tpu.memory_space<vmem>>, vector<1x128xf32>
    %5 = vector.broadcast %4 : vector<1x128xf32> to vector<256x128xf32>
    %6 = arith.addf %3, %5 : vector<256x128xf32>
    %cst_5 = arith.constant 0.000000e+00 : f32
    %7 = vector.broadcast %cst_5 : f32 to vector<256x128xf32>
    %8 = arith.maximumf %6, %7 : vector<256x128xf32>
    %9 = arith.truncf %8 : vector<256x128xf32> to vector<256x128xbf16>
    %c0_6 = arith.constant 0 : index
    %c0_7 = arith.constant 0 : index
    %10 = vector.load %arg4[%c0_6, %c0_7] : memref<128x128xbf16, #tpu.memory_space<vmem>>, vector<128x128xbf16>
    %cst_8 = arith.constant dense<0.000000e+00> : vector<256x128xf32>
    %11 = tpu.matmul %9, %10, %cst_8 {dimension_numbers = #tpu.dot_dimension_numbers<[1], [0], [0], [1], [0, 0, 1, 1], [], []>} : vector<256x128xbf16>, vector<128x128xbf16>, vector<256x128xf32> -> vector<256x128xf32>
    %c0_9 = arith.constant 0 : index
    %c0_10 = arith.constant 0 : index
    %12 = vector.load %arg5[%c0_9, %c0_10] : memref<1x128xf32, #tpu.memory_space<vmem>>, vector<1x128xf32>
    %13 = vector.broadcast %12 : vector<1x128xf32> to vector<256x128xf32>
    %14 = arith.addf %11, %13 : vector<256x128xf32>
    %cst_11 = arith.constant 0.000000e+00 : f32
    %15 = vector.broadcast %cst_11 : f32 to vector<256x128xf32>
    %16 = arith.maximumf %14, %15 : vector<256x128xf32>
    %17 = arith.truncf %16 : vector<256x128xf32> to vector<256x128xbf16>
    %c0_12 = arith.constant 0 : index
    %c0_13 = arith.constant 0 : index
    %18 = vector.load %arg6[%c0_12, %c0_13] : memref<128x128xbf16, #tpu.memory_space<vmem>>, vector<128x128xbf16>
    %cst_14 = arith.constant dense<0.000000e+00> : vector<256x128xf32>
    %19 = tpu.matmul %17, %18, %cst_14 {dimension_numbers = #tpu.dot_dimension_numbers<[1], [0], [0], [1], [0, 0, 1, 1], [], []>} : vector<256x128xbf16>, vector<128x128xbf16>, vector<256x128xf32> -> vector<256x128xf32>
    %c0_15 = arith.constant 0 : index
    %c0_16 = arith.constant 0 : index
    %20 = vector.load %arg7[%c0_15, %c0_16] : memref<1x128xf32, #tpu.memory_space<vmem>>, vector<1x128xf32>
    %21 = vector.broadcast %20 : vector<1x128xf32> to vector<256x128xf32>
    %22 = arith.addf %19, %21 : vector<256x128xf32>
    %23 = tpu.iota {dimensions = array<i32: 1>} : vector<256x128xi32>
    %24 = math.tanh %22 : vector<256x128xf32>
    %cst_17 = arith.constant 2.000000e+00 : f32
    %25 = vector.broadcast %cst_17 : f32 to vector<256x128xf32>
    %26 = arith.mulf %24, %25 : vector<256x128xf32>
    %cst_18 = arith.constant 0.000000e+00 : f32
    %27 = vector.broadcast %cst_18 : f32 to vector<256x128xf32>
    %28 = arith.maximumf %22, %27 : vector<256x128xf32>
    %29 = math.absf %22 : vector<256x128xf32>
    %cst_19 = arith.constant 0.000000e+00 : f32
    %30 = vector.broadcast %cst_19 : f32 to vector<256x128xf32>
    %31 = arith.subf %30, %29 : vector<256x128xf32>
    %32 = math.exp %31 : vector<256x128xf32>
    %33 = math.log1p %32 : vector<256x128xf32>
    %34 = arith.addf %28, %33 : vector<256x128xf32>
    %c8_i32 = arith.constant 8 : i32
    %35 = vector.broadcast %c8_i32 : i32 to vector<256x128xi32>
    %36 = arith.cmpi slt, %23, %35 : vector<256x128xi32>
    %37 = arith.select %36, %26, %34 : vector<256x128xi1>, vector<256x128xf32>
    %c0_20 = arith.constant 0 : index
    %c0_21 = arith.constant 0 : index
    %38 = vector.load %arg8[%c0_20, %c0_21] : memref<256x128xf32, #tpu.memory_space<vmem>>, vector<256x128xf32>
    tpu.vector_store %arg8[%c0_20, %c0_21], %37 {strides = array<i32>} : memref<256x128xf32, #tpu.memory_space<vmem>>, vector<256x128xf32>,
    return
  }
  func.func @transform_0(%arg0: i32) -> (i32, i32) {
    %c0_i32 = arith.constant 0 : i32
    %c0_i32_0 = arith.constant 0 : i32
    return %arg0, %c0_i32 : i32, i32
  }
  func.func @transform_1(%arg0: i32) -> (i32, i32) {
    %c0_i32 = arith.constant 0 : i32
    %c0_i32_0 = arith.constant 0 : i32
    %c0_i32_1 = arith.constant 0 : i32
    return %c0_i32, %c0_i32_0 : i32, i32
  }
  func.func @transform_2(%arg0: i32) -> (i32, i32) {
    %c0_i32 = arith.constant 0 : i32
    %c0_i32_0 = arith.constant 0 : i32
    %c0_i32_1 = arith.constant 0 : i32
    return %c0_i32, %c0_i32_0 : i32, i32
  }
  func.func @transform_3(%arg0: i32) -> (i32, i32) {
    %c0_i32 = arith.constant 0 : i32
    %c0_i32_0 = arith.constant 0 : i32
    %c0_i32_1 = arith.constant 0 : i32
    return %c0_i32, %c0_i32_0 : i32, i32
  }
  func.func @transform_4(%arg0: i32) -> (i32, i32) {
    %c0_i32 = arith.constant 0 : i32
    %c0_i32_0 = arith.constant 0 : i32
    %c0_i32_1 = arith.constant 0 : i32
    return %c0_i32, %c0_i32_0 : i32, i32
  }
  func.func @transform_5(%arg0: i32) -> (i32, i32) {
    %c0_i32 = arith.constant 0 : i32
    %c0_i32_0 = arith.constant 0 : i32
    %c0_i32_1 = arith.constant 0 : i32
    return %c0_i32, %c0_i32_0 : i32, i32
  }
  func.func @transform_6(%arg0: i32) -> (i32, i32) {
    %c0_i32 = arith.constant 0 : i32
    %c0_i32_0 = arith.constant 0 : i32
    %c0_i32_1 = arith.constant 0 : i32
    return %c0_i32, %c0_i32_0 : i32, i32
  }
  func.func @transform_7(%arg0: i32) -> (i32, i32) {
    %c0_i32 = arith.constant 0 : i32
    %c0_i32_0 = arith.constant 0 : i32
    return %arg0, %c0_i32 : i32, i32
  }
}

</mosaic_0001>

<bundles_post_ra>
// kernel: tpu_custom_call.1
= control target key start
LH: loop header
LB: loop body
LE: loop exit
PB: predicated region body
PF: predicated region fallthrough
CT: control target
= control target key end

     0   :  { %vm91_vm0 = vcmask 130048   ;;  %s2840_s0 = inlined_call_operand.vmem [shape: f32[256,16], index: 0, kind: input, shape index: {}]   ;;  %s2841_s1 = inlined_call_operand.vmem [shape: bf16[16,128], index: 1, kind: input, shape index: {}]   ;;  %s2842_s2 = inlined_call_operand.vmem [shape: f32[1,128], index: 2, kind: input, shape index: {}]   ;;  %s2843_s3 = inlined_call_operand.vmem [shape: bf16[128,128], index: 3, kind: input, shape index: {}]   ;;  %s2844_s4 = inlined_call_operand.vmem [shape: f32[1,128], index: 4, kind: input, shape index: {}]   ;;  %s2845_s5 = inlined_call_operand.vmem [shape: bf16[128,128], index: 5, kind: input, shape index: {}]   ;;  %s2846_s6 = inlined_call_operand.vmem [shape: f32[1,128], index: 6, kind: input, shape index: {}]   ;;  %s2847_s7 = inlined_call_operand.hbm [shape: f32[256,128], index: 7, kind: output, shape index: {}]  }
   0x1   :  { %v1724_v0 = vld [vmem:[%s2841_s1] sm:$0xff]   ;;  %v29_v2 = vld [vmem:[%s2840_s0 + $0x8] sm:$0xff]  ;;  %v30_v3 = vld [vmem:[%s2840_s0 + $0x10] sm:$0xff] }
   0x2   :  { %v28_v1 = vld [vmem:[%s2840_s0] sm:$0xff]  ;;  %1589 = vmatprep.subr.bf16.mxu0 %v1724_v0  ;;  %v31_v5 = vld [vmem:[%s2840_s0 + $0x18] sm:$0xff]  ;;  %v33_v7 = vld [vmem:[%s2840_s0 + $0x28] sm:$0xff]  ;;  %1719 = vmatprep.subr.bf16.mxu1 %v1724_v0 }
   0x3   :  { %v60_v4 = vpack.c.bf16 %v29_v2, %v28_v1  ;;  %v32_v6 = vld [vmem:[%s2840_s0 + $0x20] sm:$0xff]  ;;  %1590 = vmatpush3.bf16.msra.mxu0 %v1724_v0  ;;  %v61_v8 = vpack.c.bf16 %v31_v5, %v30_v3  ;;  %1720 = vmatpush3.bf16.msra.mxu1 %v1724_v0  ;;  %v34_v10 = vld [vmem:[%s2840_s0 + $0x30] sm:$0xff]  ;;  %v35_v11 = vld [vmem:[%s2840_s0 + $0x38] sm:$0xff] }
   0x4   :  { %v62_v9 = vpack.c.bf16 %v33_v7, %v32_v6  ;;  %v44_v12 = vld [vmem:[%s2840_s0 + $0x80] sm:$0xff]  ;;  %v45_v13 = vld [vmem:[%s2840_s0 + $0x88] sm:$0xff]  ;;  %v46_v15 = vld [vmem:[%s2840_s0 + $0x90] sm:$0xff]  ;;  %v63_v23 = vpack.c.bf16 %v35_v11, %v34_v10 }
   0x5   :  { %1591 = vmatprep.mubr.msk.bf16.mxu0 %vm91_vm0, %v60_v4  ;;  %v68_v14 = vpack.c.bf16 %v45_v13, %v44_v12  ;;  %v47_v16 = vld [vmem:[%s2840_s0 + $0x98] sm:$0xff]  ;;  %v48_v17 = vld [vmem:[%s2840_s0 + $0xa0] sm:$0xff]  ;;  %v37_v19 = vld [vmem:[%s2840_s0 + $0x48] sm:$0xff] }
   0x6   :  { %1592 = vmatmul.mubr.msk.bf16.vlgmr.msra.gmra.mxu0 %vm91_vm0, %v61_v8  ;;  %v36_v18 = vld [vmem:[%s2840_s0 + $0x40] sm:$0xff]  ;;  %v69_v20 = vpack.c.bf16 %v47_v16, %v46_v15  ;;  %v49_v21 = vld [vmem:[%s2840_s0 + $0xa8] sm:$0xff]  ;;  %v50_v24 = vld [vmem:[%s2840_s0 + $0xb0] sm:$0xff] }
   0x7   :  { %1595 = vmatprep.mubr.msk.bf16.mxu0 %vm91_vm0, %v62_v9  ;;  %1607 = vmatprep.mubr.msk.bf16.mxu1 %vm91_vm0, %v68_v14  ;;  %v70_v22 = vpack.c.bf16 %v49_v21, %v48_v17  ;;  %v51_v25 = vld [vmem:[%s2840_s0 + $0xb8] sm:$0xff]  ;;  %v64_v26 = vpack.c.bf16 %v37_v19, %v36_v18  ;;  %v52_v27 = vld [vmem:[%s2840_s0 + $0xc0] sm:$0xff]  ;;  %v53_v28 = vld [vmem:[%s2840_s0 + $0xc8] sm:$0xff] }
   0x8   :  { %1608 = vmatmul.mubr.msk.bf16.vlgmr.msra.gmra.mxu1 %vm91_vm0, %v69_v20  ;;  %v1725_v29 = vld [vmem:[%s2843_s3 + $0x38] sm:$0xff]   ;;  %v38_v30 = vld [vmem:[%s2840_s0 + $0x50] sm:$0xff]  ;;  %v40_v33 = vld [vmem:[%s2840_s0 + $0x60] sm:$0xff]  ;;  %v71_v34 = vpack.c.bf16 %v51_v25, %v50_v24  ;;  %v72_v36 = vpack.c.bf16 %v53_v28, %v52_v27 }
   0x9   :  { %1611 = vmatprep.mubr.msk.bf16.mxu1 %vm91_vm0, %v70_v22  ;;  %v39_v31 = vld [vmem:[%s2840_s0 + $0x58] sm:$0xff]  ;;  %v1726_v32 = vld [vmem:[%s2843_s3 + $0x30] sm:$0xff]   ;;  %1623 = vmatprep.subr.bf16.mxu1 %v1725_v29  ;;  %v41_v35 = vld [vmem:[%s2840_s0 + $0x68] sm:$0xff] }
   0xa   :  { %1624 = vmatpush3.bf16.msra.mxu1 %v1725_v29  ;;  %v1727_v37 = vld [vmem:[%s2843_s3 + $0x28] sm:$0xff]   ;;  %v54_v38 = vld [vmem:[%s2840_s0 + $0xd0] sm:$0xff]  ;;  %v55_v39 = vld [vmem:[%s2840_s0 + $0xd8] sm:$0xff]  ;;  %v65_v40 = vpack.c.bf16 %v39_v31, %v38_v30  ;;  %v66_v44 = vpack.c.bf16 %v41_v35, %v40_v33 }
   0xb   :  { %1625 = vmatprep.subr.bf16.mxu1 %v1726_v32  ;;  %v56_v41 = vld [vmem:[%s2840_s0 + $0xe0] sm:$0xff]  ;;  %v57_v42 = vld [vmem:[%s2840_s0 + $0xe8] sm:$0xff]  ;;  %v42_v45 = vld [vmem:[%s2840_s0 + $0x70] sm:$0xff]  ;;  %v73_v47 = vpack.c.bf16 %v55_v39, %v54_v38 }
   0xc   :  { %v1728_v43 = vld [vmem:[%s2843_s3 + $0x20] sm:$0xff]   ;;  %v43_v46 = vld [vmem:[%s2840_s0 + $0x78] sm:$0xff]  ;;  %v74_v48 = vpack.c.bf16 %v57_v42, %v56_v41 }
   0xd   :  { %v1729_v49 = vld [vmem:[%s2843_s3 + $0x18] sm:$0xff]  }
   0xe   :  { %1596 = vmatmul.mubr.msk.bf16.gmra.mxu0 %vm91_vm0, %v63_v23  ;;  %1626 = vmatpush3.bf16.msra.mxu1 %v1726_v32 }
   0xf   :  { %1599 = vmatprep.mubr.msk.bf16.mxu0 %vm91_vm0, %v64_v26  ;;  %1627 = vmatprep.subr.bf16.mxu1 %v1727_v37 }
  0x10   :  { %1612 = vmatmul.mubr.msk.bf16.gmra.mxu1 %vm91_vm0, %v71_v34 }
  0x11   :  { %1615 = vmatprep.mubr.msk.bf16.mxu1 %vm91_vm0, %v72_v36 }
  0x12   :  { %1628 = vmatpush3.bf16.msra.mxu1 %v1727_v37 }
  0x13   :  { %1629 = vmatprep.subr.bf16.mxu1 %v1728_v43 }
  0x16   :  { %1600 = vmatmul.mubr.msk.bf16.gmra.mxu0 %vm91_vm0, %v65_v40 }
  0x17   :  { %1603 = vmatprep.mubr.msk.bf16.mxu0 %vm91_vm0, %v66_v44 }
  0x18   :  { %12 = vsyncpa [#allocation3], 0  ;;  %v67_v50 = vpack.c.bf16 %v43_v46, %v42_v45  ;;  %1616 = vmatmul.mubr.msk.bf16.gmra.mxu1 %vm91_vm0, %v73_v47  ;;  %v58_v51 = vld [vmem:[%s2840_s0 + $0xf0] sm:$0xff]  ;;  %v59_v52 = vld [vmem:[%s2840_s0 + $0xf8] sm:$0xff] }
  0x19   :  { %1619 = vmatprep.mubr.msk.bf16.mxu1 %vm91_vm0, %v74_v48  ;;  %1630 = vmatpush3.bf16.msra.mxu1 %v1728_v43  ;;  %v75_v53 = vpack.c.bf16 %v59_v52, %v58_v51  ;;  %v1730_v54 = vld [vmem:[%s2843_s3 + $0x10] sm:$0xff]   ;;  %v1731_v55 = vld [vmem:[%s2843_s3 + $0x8] sm:$0xff]   ;;  %v1732_v56 = vld [vmem:[%s2843_s3] sm:$0xff]  }
  0x1a   :  { %1631 = vmatprep.subr.bf16.mxu1 %v1729_v49  ;;  %v1733_v57 = vld [vmem:[%s2845_s5 + $0x38] sm:$0xff]   ;;  %v1734_v58 = vld [vmem:[%s2845_s5 + $0x30] sm:$0xff]   ;;  %v1735_v59 = vld [vmem:[%s2845_s5 + $0x28] sm:$0xff]  }
  0x1b   :  { %1671 = vmatprep.subr.bf16.mxu0 %v1733_v57  ;;  %v1736_v60 = vld [vmem:[%s2845_s5 + $0x20] sm:$0xff]   ;;  %v1737_v61 = vld [vmem:[%s2845_s5 + $0x18] sm:$0xff]  }
  0x1c   :  { %1672 = vmatpush3.bf16.msra.mxu0 %v1733_v57  ;;  %v2156_v0 = vld [vmem:[%s2842_s2] ss:$0 sm:$0xff] }
  0x1d   :  { %1632 = vmatpush3.bf16.msra.mxu1 %v1729_v49  ;;  %1673 = vmatprep.subr.bf16.mxu0 %v1734_v58 }
  0x1e   :  { %1604 = vmatmul.mubr.msk.bf16.gmra.mxu0 %vm91_vm0, %v67_v50  ;;  %1633 = vmatprep.subr.bf16.mxu1 %v1730_v54 }
  0x20   :  { %1620 = vmatmul.mubr.msk.bf16.gmra.mxu1 %vm91_vm0, %v75_v53  ;;  %1674 = vmatpush3.bf16.msra.mxu0 %v1734_v58 }
  0x21   :  { %1634 = vmatpush3.bf16.msra.mxu1 %v1730_v54  ;;  %1675 = vmatprep.subr.bf16.mxu0 %v1735_v59 }
  0x22   :  { %1635 = vmatprep.subr.bf16.mxu1 %v1731_v55 }
  0x24   :  { %1676 = vmatpush3.bf16.msra.mxu0 %v1735_v59 }
  0x25   :  { %1636 = vmatpush3.bf16.msra.mxu1 %v1731_v55  ;;  %1677 = vmatprep.subr.bf16.mxu0 %v1736_v60 }
  0x26   :  { %1637 = vmatprep.subr.bf16.mxu1 %v1732_v56 }
  0x28   :  { %1678 = vmatpush3.bf16.msra.mxu0 %v1736_v60 }
  0x29   :  { %1638 = vmatpush3.bf16.msra.mxu1 %v1732_v56  ;;  %1679 = vmatprep.subr.bf16.mxu0 %v1737_v61 }
  0x2c   :  { %1680 = vmatpush3.bf16.msra.mxu0 %v1737_v61 }
  0xc6   :  { %v1593_v62 = vpop.f32.mrf.mxu0 }
  0xc7   :  { %v183_v5 = vadd.f32 %v1593_v62, %v2156_v0 }
  0xc8   :  { %v174_v63 = vpop.f32.mrf.mxu0  ;;  %v2158_v2 = vpop.f32.mrf.mxu1 }
  0xc9   :  { %v175_v3 = vadd.f32 %v2156_v0, %v174_v63  ;;  %v303_v14 = vmax.f32 %v183_v5, 0.0 }
  0xca   :  { %v1594_v1 = vpop.f32.mrf.mxu0  ;;  %v238_v7 = vpop.f32.mrf.mxu1 }
  0xcb   :  { %v186_v4 = vadd.f32 %v1594_v1, %v2156_v0  ;;  %v301_v12 = vmax.f32 %v175_v3, 0.0  ;;  %v239_v52 = vadd.f32 %v2156_v0, %v238_v7 }
  0xcc   :  { %v177_v6 = vpop.f32.mrf.mxu0  ;;  %v2164_v11 = vpop.f32.mrf.mxu1 }
  0xcd   :  { %v178_v8 = vadd.f32 %v2156_v0, %v177_v6  ;;  %v304_v9 = vmax.f32 %v186_v4, 0.0  ;;  %v317_v61 = vmax.f32 %v239_v52, 0.0  ;;  %v2217_v52 = vld [vmem:[%s2844_s4] ss:$0 sm:$0xff] }
  0xce   :  { %v1597_v10 = vpop.f32.mrf.mxu0  ;;  %v241_v16 = vpop.f32.mrf.mxu1 }
  0xcf   :  { %v302_v13 = vmax.f32 %v178_v8, 0.0  ;;  %v334_v18 = vpack.c.bf16 %v304_v9, %v303_v14  ;;  %v199_v23 = vadd.f32 %v1597_v10, %v2156_v0  ;;  %v242_v53 = vadd.f32 %v2156_v0, %v241_v16 }
  0xd0   :  { %v190_v15 = vpop.f32.mrf.mxu0  ;;  %v2166_v20 = vpop.f32.mrf.mxu1  ;;  %v250_v14 = vadd.f32 %v2164_v11, %v2156_v0 }
  0xd1   :  { %v333_v17 = vpack.c.bf16 %v302_v13, %v301_v12  ;;  %v191_v21 = vadd.f32 %v2156_v0, %v190_v15  ;;  %v307_v32 = vmax.f32 %v199_v23, 0.0  ;;  %v318_v63 = vmax.f32 %v242_v53, 0.0 }
  0xd2   :  { %v1598_v19 = vpop.f32.mrf.mxu0  ;;  %v254_v25 = vpop.f32.mrf.mxu1  ;;  %v247_v12 = vadd.f32 %v2158_v2, %v2156_v0  ;;  %v263_v2 = vadd.f32 %v2166_v20, %v2156_v0 }
  0xd3   :  { %v202_v22 = vadd.f32 %v1598_v19, %v2156_v0  ;;  %1639 = vmatprep.mubr.bf16.mxu1 %v333_v17  ;;  %v305_v30 = vmax.f32 %v191_v21, 0.0  ;;  %v341_v8 = vpack.c.bf16 %v318_v63, %v317_v61  ;;  %v255_v9 = vadd.f32 %v2156_v0, %v254_v25 }
  0xd4   :  { %v193_v24 = vpop.f32.mrf.mxu0  ;;  %1640 = vmatmul.mubr.bf16.vlgmr.msra.gmra.mxu1 %v334_v18  ;;  %v2172_v29 = vpop.f32.mrf.mxu1  ;;  %v319_v18 = vmax.f32 %v247_v12, 0.0  ;;  %v320_v19 = vmax.f32 %v250_v14, 0.0 }
  0xd5   :  { %v194_v26 = vadd.f32 %v2156_v0, %v193_v24  ;;  %v308_v27 = vmax.f32 %v202_v22, 0.0  ;;  %v321_v16 = vmax.f32 %v255_v9, 0.0  ;;  %v266_v11 = vadd.f32 %v2172_v29, %v2156_v0 }
  0xd6   :  { %v1601_v28 = vpop.f32.mrf.mxu0  ;;  %v257_v34 = vpop.f32.mrf.mxu1  ;;  %v342_v25 = vpack.c.bf16 %v320_v19, %v319_v18 }
  0xd7   :  { %v306_v31 = vmax.f32 %v194_v26, 0.0  ;;  %v336_v36 = vpack.c.bf16 %v308_v27, %v307_v32  ;;  %v215_v41 = vadd.f32 %v1601_v28, %v2156_v0  ;;  %v258_v10 = vadd.f32 %v2156_v0, %v257_v34 }
  0xd8   :  { %v206_v33 = vpop.f32.mrf.mxu0  ;;  %v2174_v38 = vpop.f32.mrf.mxu1 }
  0xd9   :  { %v335_v35 = vpack.c.bf16 %v306_v31, %v305_v30  ;;  %v207_v39 = vadd.f32 %v2156_v0, %v206_v33  ;;  %v311_v49 = vmax.f32 %v215_v41, 0.0  ;;  %v322_v17 = vmax.f32 %v258_v10, 0.0 }
  0xda   :  { %v1602_v37 = vpop.f32.mrf.mxu0  ;;  %v270_v46 = vpop.f32.mrf.mxu1  ;;  %v323_v30 = vmax.f32 %v263_v2, 0.0  ;;  %v324_v31 = vmax.f32 %v266_v11, 0.0  ;;  %v279_v20 = vadd.f32 %v2174_v38, %v2156_v0  ;;  %v1738_v38 = vld [vmem:[%s2845_s5 + $0x10] sm:$0xff]  }
  0xdb   :  { %v218_v40 = vadd.f32 %v1602_v37, %v2156_v0  ;;  %1643 = vmatprep.mubr.bf16.mxu1 %v335_v35  ;;  %v309_v47 = vmax.f32 %v207_v39, 0.0  ;;  %v343_v22 = vpack.c.bf16 %v322_v17, %v321_v16  ;;  %v271_v23 = vadd.f32 %v2156_v0, %v270_v46  ;;  %1681 = vmatprep.subr.bf16.mxu0 %v1738_v38 }
  0xdc   :  { %v209_v42 = vpop.f32.mrf.mxu0  ;;  %1644 = vmatmul.mubr.bf16.gmra.mxu1 %v336_v36  ;;  %v1618_v56 = vpop.f32.mrf.mxu1  ;;  %v344_v36 = vpack.c.bf16 %v324_v31, %v323_v30  ;;  %1682 = vmatpush3.bf16.msra.mxu0 %v1738_v38 }
  0xdd   :  { %v210_v43 = vadd.f32 %v2156_v0, %v209_v42  ;;  %v312_v44 = vmax.f32 %v218_v40, 0.0  ;;  %v325_v27 = vmax.f32 %v271_v23, 0.0  ;;  %v282_v37 = vadd.f32 %v1618_v56, %v2156_v0 }
  0xde   :  { %v1605_v45 = vpop.f32.mrf.mxu0  ;;  %v273_v3 = vpop.f32.mrf.mxu1  ;;  %v327_v40 = vmax.f32 %v279_v20, 0.0 }
  0xdf   :  { %v310_v48 = vmax.f32 %v210_v43, 0.0  ;;  %v338_v54 = vpack.c.bf16 %v312_v44, %v311_v49  ;;  %v231_v59 = vadd.f32 %v1605_v45, %v2156_v0  ;;  %v274_v24 = vadd.f32 %v2156_v0, %v273_v3  ;;  %v1739_v49 = vld [vmem:[%s2845_s5 + $0x8] sm:$0xff]  }
  0xe0   :  { %v222_v50 = vpop.f32.mrf.mxu0  ;;  %v1621_v15 = vpop.f32.mrf.mxu1  ;;  %v328_v41 = vmax.f32 %v282_v37, 0.0  ;;  %1683 = vmatprep.subr.bf16.mxu0 %v1739_v49 }
  0xe1   :  { %v337_v51 = vpack.c.bf16 %v310_v48, %v309_v47  ;;  %v223_v57 = vadd.f32 %v2156_v0, %v222_v50  ;;  %v315_v6 = vmax.f32 %v231_v59, 0.0  ;;  %v326_v28 = vmax.f32 %v274_v24, 0.0  ;;  %1684 = vmatpush3.bf16.msra.mxu0 %v1739_v49 }
  0xe2   :  { %v1606_v55 = vpop.f32.mrf.mxu0  ;;  %v286_v21 = vpop.f32.mrf.mxu1  ;;  %v346_v43 = vpack.c.bf16 %v328_v41, %v327_v40  ;;  %v295_v44 = vadd.f32 %v1621_v15, %v2156_v0 }
  0xe3   :  { %v234_v58 = vadd.f32 %v1606_v55, %v2156_v0  ;;  %1647 = vmatprep.mubr.bf16.mxu1 %v337_v51  ;;  %v313_v4 = vmax.f32 %v223_v57, 0.0  ;;  %v345_v33 = vpack.c.bf16 %v326_v28, %v325_v27  ;;  %v287_v34 = vadd.f32 %v2156_v0, %v286_v21 }
  0xe4   :  { %v225_v60 = vpop.f32.mrf.mxu0  ;;  %1648 = vmatmul.mubr.bf16.gmra.mxu1 %v338_v54  ;;  %v1622_v26 = vpop.f32.mrf.mxu1  ;;  %v331_v46 = vmax.f32 %v295_v44, 0.0 }
  0xe5   :  { %v226_v62 = vadd.f32 %v2156_v0, %v225_v60  ;;  %v316_v1 = vmax.f32 %v234_v58, 0.0  ;;  %v329_v29 = vmax.f32 %v287_v34, 0.0  ;;  %v298_v45 = vadd.f32 %v1622_v26, %v2156_v0 }
  0xe6   :  { %v289_v32 = vpop.f32.mrf.mxu1 }
  0xe7   :  { %v314_v5 = vmax.f32 %v226_v62, 0.0  ;;  %v340_v13 = vpack.c.bf16 %v316_v1, %v315_v6  ;;  %v290_v35 = vadd.f32 %v2156_v0, %v289_v32  ;;  %v332_v47 = vmax.f32 %v298_v45, 0.0  ;;  %v1740_v0 = vld [vmem:[%s2845_s5] sm:$0xff]  }
  0xe8   :  { %1685 = vmatprep.subr.bf16.mxu0 %v1740_v0 }
  0xe9   :  { %v339_v7 = vpack.c.bf16 %v314_v5, %v313_v4  ;;  %v330_v39 = vmax.f32 %v290_v35, 0.0  ;;  %v348_v48 = vpack.c.bf16 %v332_v47, %v331_v46  ;;  %1686 = vmatpush3.bf16.msra.mxu0 %v1740_v0 }
  0xeb   :  { %1651 = vmatprep.mubr.bf16.mxu1 %v339_v7  ;;  %v347_v42 = vpack.c.bf16 %v330_v39, %v329_v29 }
  0xec   :  { %1652 = vmatmul.mubr.bf16.gmra.mxu1 %v340_v13 }
  0xed   :  { %1655 = vmatprep.mubr.bf16.mxu1 %v341_v8 }
  0xf4   :  { %1656 = vmatmul.mubr.bf16.gmra.mxu1 %v342_v25 }
  0xf5   :  { %1659 = vmatprep.mubr.bf16.mxu1 %v343_v22 }
  0xfc   :  { %1660 = vmatmul.mubr.bf16.gmra.mxu1 %v344_v36 }
  0xfd   :  { %1663 = vmatprep.mubr.bf16.mxu1 %v345_v33 }
 0x104   :  { %1664 = vmatmul.mubr.bf16.gmra.mxu1 %v346_v43 }
 0x105   :  { %1667 = vmatprep.mubr.bf16.mxu1 %v347_v42 }
 0x10c   :  { %1668 = vmatmul.mubr.bf16.gmra.mxu1 %v348_v48 }
 0x194   :  { %v1641_v50 = vpop.f32.mrf.mxu1 }
 0x195   :  { %v463_v56 = vadd.f32 %v1641_v50, %v2217_v52 }
 0x196   :  { %v454_v51 = vpop.f32.mrf.mxu1 }
 0x197   :  { %v455_v54 = vadd.f32 %v2217_v52, %v454_v51  ;;  %v583_v63 = vmax.f32 %v463_v56, 0.0 }
 0x198   :  { %v1642_v53 = vpop.f32.mrf.mxu1 }
 0x199   :  { %v466_v55 = vadd.f32 %v1642_v53, %v2217_v52  ;;  %v581_v61 = vmax.f32 %v455_v54, 0.0 }
 0x19a   :  { %v457_v57 = vpop.f32.mrf.mxu1 }
 0x19b   :  { %v458_v58 = vadd.f32 %v2217_v52, %v457_v57  ;;  %v584_v59 = vmax.f32 %v466_v55, 0.0 }
 0x19c   :  { %v1645_v60 = vpop.f32.mrf.mxu1 }
 0x19d   :  { %v582_v62 = vmax.f32 %v458_v58, 0.0  ;;  %v614_v4 = vpack.c.bf16 %v584_v59, %v583_v63  ;;  %v479_v8 = vadd.f32 %v1645_v60, %v2217_v52 }
 0x19e   :  { %v470_v1 = vpop.f32.mrf.mxu1 }
 0x19f   :  { %v613_v3 = vpack.c.bf16 %v582_v62, %v581_v61  ;;  %v471_v6 = vadd.f32 %v2217_v52, %v470_v1  ;;  %v587_v16 = vmax.f32 %v479_v8, 0.0 }
 0x1a0   :  { %v1646_v5 = vpop.f32.mrf.mxu1 }
 0x1a1   :  { %v482_v7 = vadd.f32 %v1646_v5, %v2217_v52  ;;  %1687 = vmatprep.mubr.bf16.mxu0 %v613_v3  ;;  %v585_v14 = vmax.f32 %v471_v6, 0.0 }
 0x1a2   :  { %v473_v9 = vpop.f32.mrf.mxu1  ;;  %1688 = vmatmul.mubr.bf16.vlgmr.msra.gmra.mxu0 %v614_v4 }
 0x1a3   :  { %v474_v10 = vadd.f32 %v2217_v52, %v473_v9  ;;  %v588_v12 = vmax.f32 %v482_v7, 0.0 }
 0x1a4   :  { %v1649_v13 = vpop.f32.mrf.mxu1 }
 0x1a5   :  { %v586_v15 = vmax.f32 %v474_v10, 0.0  ;;  %v616_v19 = vpack.c.bf16 %v588_v12, %v587_v16  ;;  %v495_v24 = vadd.f32 %v1649_v13, %v2217_v52 }
 0x1a6   :  { %v486_v17 = vpop.f32.mrf.mxu1 }
 0x1a7   :  { %v615_v18 = vpack.c.bf16 %v586_v15, %v585_v14  ;;  %v487_v22 = vadd.f32 %v2217_v52, %v486_v17  ;;  %v591_v30 = vmax.f32 %v495_v24, 0.0 }
 0x1a8   :  { %v1650_v21 = vpop.f32.mrf.mxu1 }
 0x1a9   :  { %v498_v23 = vadd.f32 %v1650_v21, %v2217_v52  ;;  %1691 = vmatprep.mubr.bf16.mxu0 %v615_v18  ;;  %v589_v27 = vmax.f32 %v487_v22, 0.0 }
 0x1aa   :  { %v489_v25 = vpop.f32.mrf.mxu1  ;;  %1692 = vmatmul.mubr.bf16.gmra.mxu0 %v616_v19 }
 0x1ab   :  { %v490_v2 = vadd.f32 %v2217_v52, %v489_v25  ;;  %v592_v11 = vmax.f32 %v498_v23, 0.0 }
 0x1ac   :  { %v1653_v26 = vpop.f32.mrf.mxu1 }
 0x1ad   :  { %v590_v28 = vmax.f32 %v490_v2, 0.0  ;;  %v618_v33 = vpack.c.bf16 %v592_v11, %v591_v30  ;;  %v511_v20 = vadd.f32 %v1653_v26, %v2217_v52 }
 0x1ae   :  { %v502_v31 = vpop.f32.mrf.mxu1 }
 0x1af   :  { %v617_v32 = vpack.c.bf16 %v590_v28, %v589_v27  ;;  %v503_v35 = vadd.f32 %v2217_v52, %v502_v31  ;;  %v595_v43 = vmax.f32 %v511_v20, 0.0 }
 0x1b0   :  { %v1654_v34 = vpop.f32.mrf.mxu1 }
 0x1b1   :  { %v514_v36 = vadd.f32 %v1654_v34, %v2217_v52  ;;  %1695 = vmatprep.mubr.bf16.mxu0 %v617_v32  ;;  %v593_v41 = vmax.f32 %v503_v35, 0.0 }
 0x1b2   :  { %v505_v37 = vpop.f32.mrf.mxu1  ;;  %1696 = vmatmul.mubr.bf16.gmra.mxu0 %v618_v33 }
 0x1b3   :  { %v506_v29 = vadd.f32 %v2217_v52, %v505_v37  ;;  %v596_v39 = vmax.f32 %v514_v36, 0.0 }
 0x1b4   :  { %v1657_v40 = vpop.f32.mrf.mxu1 }
 0x1b5   :  { %v594_v42 = vmax.f32 %v506_v29, 0.0  ;;  %v620_v46 = vpack.c.bf16 %v596_v39, %v595_v43  ;;  %v527_v49 = vadd.f32 %v1657_v40, %v2217_v52  ;;  %v2254_v29 = vld [vmem:[%s2846_s6] ss:$0 sm:$0xff] }
 0x1b6   :  { %v518_v44 = vpop.f32.mrf.mxu1 }
 0x1b7   :  { %v619_v45 = vpack.c.bf16 %v594_v42, %v593_v41  ;;  %v519_v48 = vadd.f32 %v2217_v52, %v518_v44  ;;  %v599_v56 = vmax.f32 %v527_v49, 0.0 }
 0x1b8   :  { %v1658_v47 = vpop.f32.mrf.mxu1 }
 0x1b9   :  { %v530_v38 = vadd.f32 %v1658_v47, %v2217_v52  ;;  %1699 = vmatprep.mubr.bf16.mxu0 %v619_v45  ;;  %v597_v54 = vmax.f32 %v519_v48, 0.0 }
 0x1ba   :  { %v521_v0 = vpop.f32.mrf.mxu1  ;;  %1700 = vmatmul.mubr.bf16.gmra.mxu0 %v620_v46 }
 0x1bb   :  { %v522_v50 = vadd.f32 %v2217_v52, %v521_v0  ;;  %v600_v51 = vmax.f32 %v530_v38, 0.0 }
 0x1bc   :  { %v1661_v53 = vpop.f32.mrf.mxu1 }
 0x1bd   :  { %v598_v55 = vmax.f32 %v522_v50, 0.0  ;;  %v622_v59 = vpack.c.bf16 %v600_v51, %v599_v56  ;;  %v543_v63 = vadd.f32 %v1661_v53, %v2217_v52 }
 0x1be   :  { %v534_v57 = vpop.f32.mrf.mxu1 }
 0x1bf   :  { %v621_v58 = vpack.c.bf16 %v598_v55, %v597_v54  ;;  %v535_v61 = vadd.f32 %v2217_v52, %v534_v57  ;;  %v603_v8 = vmax.f32 %v543_v63, 0.0 }
 0x1c0   :  { %v1662_v60 = vpop.f32.mrf.mxu1 }
 0x1c1   :  { %v546_v62 = vadd.f32 %v1662_v60, %v2217_v52  ;;  %1703 = vmatprep.mubr.bf16.mxu0 %v621_v58  ;;  %v601_v6 = vmax.f32 %v535_v61, 0.0 }
 0x1c2   :  { %v537_v1 = vpop.f32.mrf.mxu1  ;;  %1704 = vmatmul.mubr.bf16.gmra.mxu0 %v622_v59 }
 0x1c3   :  { %v538_v3 = vadd.f32 %v2217_v52, %v537_v1  ;;  %v604_v4 = vmax.f32 %v546_v62, 0.0 }
 0x1c4   :  { %v1665_v5 = vpop.f32.mrf.mxu1 }
 0x1c5   :  { %v602_v7 = vmax.f32 %v538_v3, 0.0  ;;  %v624_v12 = vpack.c.bf16 %v604_v4, %v603_v8  ;;  %v559_v16 = vadd.f32 %v1665_v5, %v2217_v52 }
 0x1c6   :  { %v550_v9 = vpop.f32.mrf.mxu1 }
 0x1c7   :  { %v623_v10 = vpack.c.bf16 %v602_v7, %v601_v6  ;;  %v551_v14 = vadd.f32 %v2217_v52, %v550_v9  ;;  %v607_v24 = vmax.f32 %v559_v16, 0.0 }
 0x1c8   :  { %v1666_v13 = vpop.f32.mrf.mxu1 }
 0x1c9   :  { %v562_v15 = vadd.f32 %v1666_v13, %v2217_v52  ;;  %1707 = vmatprep.mubr.bf16.mxu0 %v623_v10  ;;  %v605_v22 = vmax.f32 %v551_v14, 0.0  ;;  %v861_v14 = vlaneseq }
 0x1ca   :  { %v553_v17 = vpop.f32.mrf.mxu1  ;;  %1708 = vmatmul.mubr.bf16.gmra.mxu0 %v624_v12 }
 0x1cb   :  { %v554_v18 = vadd.f32 %v2217_v52, %v553_v17  ;;  %v608_v19 = vmax.f32 %v562_v15, 0.0 }
 0x1cc   :  { %v1669_v21 = vpop.f32.mrf.mxu1 }
 0x1cd   :  { %v606_v23 = vmax.f32 %v554_v18, 0.0  ;;  %v626_v11 = vpack.c.bf16 %v608_v19, %v607_v24  ;;  %v575_v30 = vadd.f32 %v1669_v21, %v2217_v52  ;;  %v2298_v24 = vand.u32 127, %v861_v14 }
 0x1ce   :  { %v566_v25 = vpop.f32.mrf.mxu1 }
 0x1cf   :  { %v625_v2 = vpack.c.bf16 %v606_v23, %v605_v22  ;;  %v567_v27 = vadd.f32 %v2217_v52, %v566_v25  ;;  %v611_v36 = vmax.f32 %v575_v30, 0.0  ;;  %vm1407_vm2 = vcmp.lt.s32.totalorder %v2298_v24, 8 }
 0x1d0   :  { %v1670_v26 = vpop.f32.mrf.mxu1 }
 0x1d1   :  { %v578_v28 = vadd.f32 %v1670_v26, %v2217_v52  ;;  %1711 = vmatprep.mubr.bf16.mxu0 %v625_v2  ;;  %v609_v34 = vmax.f32 %v567_v27, 0.0 }
 0x1d2   :  { %v569_v31 = vpop.f32.mrf.mxu1  ;;  %1712 = vmatmul.mubr.bf16.gmra.mxu0 %v626_v11 }
 0x1d3   :  { %v570_v32 = vadd.f32 %v2217_v52, %v569_v31  ;;  %v612_v33 = vmax.f32 %v578_v28, 0.0 }
 0x1d5   :  { %v610_v35 = vmax.f32 %v570_v32, 0.0  ;;  %v628_v37 = vpack.c.bf16 %v612_v33, %v611_v36 }
 0x1d7   :  { %v627_v20 = vpack.c.bf16 %v610_v35, %v609_v34 }
 0x1d9   :  { %1715 = vmatprep.mubr.bf16.mxu0 %v627_v20 }
 0x1da   :  { %1716 = vmatmul.mubr.bf16.gmra.mxu0 %v628_v37 }
 0x262   :  { %v1689_v39 = vpop.f32.mrf.mxu0 }
 0x263   :  { %v2257_v40 = vadd.f32 %v1689_v39, %v2254_v29 }
 0x264   :  { %v734_v41 = vpop.f32.mrf.mxu0 }
 0x265   :  { %v961_v52 = vand.u32 2147483647, %v2257_v40  ;;  %v2261_v42 = vadd.f32 %v2254_v29, %v734_v41  ;;  %1741 = vtanh.f32 %v2257_v40  ;;  %v929_v25 = vmax.f32 %v2257_v40, 0.0 }
 0x266   :  { %v1690_v43 = vpop.f32.mrf.mxu0 }
 0x267   :  { %v993_v44 = vsub.f32 0.0, %v961_v52  ;;  %v959_v45 = vand.u32 2147483647, %v2261_v42  ;;  %v2265_v46 = vadd.f32 %v1690_v43, %v2254_v29  ;;  %v927_v27 = vmax.f32 %v2261_v42, 0.0 }
 0x268   :  { %v737_v47 = vpop.f32.mrf.mxu0 }
 0x269   :  { %v1027_v48 = vmul.f32 1.442695, %v993_v44  ;;  %v991_v38 = vsub.f32 0.0, %v959_v45  ;;  %v2268_v49 = vadd.f32 %v2254_v29, %v737_v47  ;;  %v962_v0 = vand.u32 2147483647, %v2265_v46 }
 0x26a   :  { %v1693_v50 = vpop.f32.mrf.mxu0  ;;  %v930_v28 = vmax.f32 %v2265_v46, 0.0 }
 0x26b   :  { %1743 = vpow2.f32 %v1027_v48  ;;  %v1023_v51 = vmul.f32 1.442695, %v991_v38  ;;  %v960_v53 = vand.u32 2147483647, %v2268_v49  ;;  %v994_v54 = vsub.f32 0.0, %v962_v0 }
 0x26c   :  { %1745 = vtanh.f32 %v2261_v42  ;;  %v2275_v55 = vadd.f32 %v1693_v50, %v2254_v29  ;;  %v750_v56 = vpop.f32.mrf.mxu0  ;;  %v928_v30 = vmax.f32 %v2268_v49, 0.0 }
 0x26d   :  { %1747 = vpow2.f32 %v1023_v51  ;;  %v992_v57 = vsub.f32 0.0, %v960_v53  ;;  %v2278_v58 = vadd.f32 %v2254_v29, %v750_v56  ;;  %v1029_v59 = vmul.f32 1.442695, %v994_v54 }
 0x26e   :  { %1749 = vtanh.f32 %v2265_v46  ;;  %v965_v60 = vand.u32 2147483647, %v2275_v55  ;;  %v1694_v61 = vpop.f32.mrf.mxu0  ;;  %v933_v33 = vmax.f32 %v2275_v55, 0.0 }
 0x26f   :  { %1751 = vtanh.f32 %v2268_v49  ;;  %v1025_v62 = vmul.f32 1.442695, %v992_v57  ;;  %v963_v63 = vand.u32 2147483647, %v2278_v58  ;;  %v2285_v3 = vadd.f32 %v1694_v61, %v2254_v29 }
 0x270   :  { %1753 = vpow2.f32 %v1029_v59  ;;  %v997_v1 = vsub.f32 0.0, %v965_v60  ;;  %v753_v4 = vpop.f32.mrf.mxu0  ;;  %v931_v20 = vmax.f32 %v2278_v58, 0.0 }
 0x271   :  { %1755 = vpow2.f32 %v1025_v62  ;;  %v995_v5 = vsub.f32 0.0, %v963_v63  ;;  %v2288_v6 = vadd.f32 %v2254_v29, %v753_v4  ;;  %v966_v8 = vand.u32 2147483647, %v2285_v3 }
 0x272   :  { %1757 = vtanh.f32 %v2275_v55  ;;  %v1035_v7 = vmul.f32 1.442695, %v997_v1  ;;  %v1697_v9 = vpop.f32.mrf.mxu0  ;;  %v1742_v18 = vpop.eup %1741  ;;  %v934_v37 = vmax.f32 %v2285_v3, 0.0 }
 0x273   :  { %1759 = vtanh.f32 %v2278_v58  ;;  %v1031_v10 = vmul.f32 1.442695, %v995_v5  ;;  %v998_v12 = vsub.f32 0.0, %v966_v8  ;;  %v964_v13 = vand.u32 2147483647, %v2288_v6 }
 0x274   :  { %1761 = vpow2.f32 %v1035_v7  ;;  %v766_v17 = vpop.f32.mrf.mxu0  ;;  %v2296_v19 = vadd.f32 %v1697_v9, %v2254_v29  ;;  %v2314_v41 = vmul.f32 2.0, %v1742_v18  ;;  %v932_v52 = vmax.f32 %v2288_v6, 0.0 }
 0x275   :  { %1763 = vpow2.f32 %v1031_v10  ;;  %v1037_v15 = vmul.f32 1.442695, %v998_v12  ;;  %v996_v16 = vsub.f32 0.0, %v964_v13  ;;  %v2302_v11 = vadd.f32 %v2254_v29, %v766_v17 }
 0x276   :  { %1765 = vtanh.f32 %v2285_v3  ;;  %v969_v34 = vand.u32 2147483647, %v2296_v19  ;;  %v1698_v44 = vpop.f32.mrf.mxu0 }
 0x277   :  { %1767 = vpow2.f32 %v1037_v15  ;;  %v1033_v22 = vmul.f32 1.442695, %v996_v16  ;;  %v967_v43 = vand.u32 2147483647, %v2302_v11  ;;  %v2329_v59 = vadd.f32 %v1698_v44, %v2254_v29 }
 0x278   :  { %v1744_v21 = vpop.eup %1743  ;;  %v1001_v53 = vsub.f32 0.0, %v969_v34 }
 0x279   :  { %v1746_v23 = vpop.eup %1745  ;;  %v1105_v2 = vadd.f32 1.0, %v1744_v21  ;;  %1769 = vpow2.f32 %v1033_v22  ;;  %v1108_v36 = vmul.f32 -0.5, %v1744_v21  ;;  %v1111_v47 = vand.u32 2147483647, %v1744_v21 }
 0x27a   :  { %v1748_v26 = vpop.eup %1747  ;;  %v2322_v50 = vmul.f32 2.0, %v1746_v23  ;;  %v999_v63 = vsub.f32 0.0, %v967_v43  ;;  %v1043_v14 = vmul.f32 1.442695, %v1001_v53  ;;  %v970_v44 = vand.u32 2147483647, %v2329_v59 }
 0x27b   :  { %v1750_v31 = vpop.eup %1749  ;;  %1771 = vlog2.f32 %v1105_v2  ;;  %v1087_v32 = vadd.f32 1.0, %v1748_v26  ;;  %v1090_v48 = vmul.f32 -0.5, %v1748_v26  ;;  %v1109_v56 = vadd.f32 1.0, %v1108_v36 }
 0x27c   :  { %v1752_v35 = vpop.eup %1751  ;;  %1773 = vtanh.f32 %v2288_v6  ;;  %v2326_v57 = vmul.f32 2.0, %v1750_v31  ;;  %v1093_v61 = vand.u32 2147483647, %v1748_v26  ;;  %vm2337_vm1 = vcmp.lt.f32.partialorder %v1111_v47, 0.0004427343  ;;  %v769_v47 = vpop.f32.mrf.mxu0 }
 0x27d   :  { %v2312_v39 = vpop.eup %1753  ;;  %1775 = vlog2.f32 %v1087_v32  ;;  %v2333_v62 = vmul.f32 2.0, %v1752_v35  ;;  %v1091_v5 = vadd.f32 1.0, %v1090_v48  ;;  %v1110_v15 = vmul.f32 %v1744_v21, %v1109_v56 }
 0x27e   :  { %v2318_v45 = vpop.eup %1755  ;;  %v1114_v38 = vadd.f32 1.0, %v2312_v39  ;;  %1777 = vtanh.f32 %v2296_v19  ;;  %v1117_v7 = vmul.f32 -0.5, %v2312_v39  ;;  %v1120_v10 = vand.u32 2147483647, %v2312_v39 }
 0x27f   :  { %v1758_v0 = vpop.eup %1757  ;;  %v1096_v51 = vadd.f32 1.0, %v2318_v45  ;;  %1779 = vtanh.f32 %v2302_v11  ;;  %v1099_v12 = vmul.f32 -0.5, %v2318_v45  ;;  %vm2353_vm3 = vcmp.lt.f32.partialorder %v1093_v61, 0.0004427343 }
 0x280   :  { %v1760_v54 = vpop.eup %1759  ;;  %1781 = vlog2.f32 %v1114_v38  ;;  %v2347_v16 = vmul.f32 2.0, %v1758_v0  ;;  %v1102_v23 = vand.u32 2147483647, %v2318_v45  ;;  %v1039_v2 = vmul.f32 1.442695, %v999_v63 }
 0x281   :  { %v2331_v60 = vpop.eup %1761  ;;  %1783 = vlog2.f32 %v1096_v51  ;;  %v2349_v17 = vmul.f32 2.0, %v1760_v54  ;;  %v1092_v31 = vmul.f32 %v1748_v26, %v1091_v5  ;;  %v1118_v32 = vadd.f32 1.0, %v1117_v7 }
 0x282   :  { %v2335_v1 = vpop.eup %1763  ;;  %v1141_v8 = vadd.f32 1.0, %v2331_v60  ;;  %vm2363_vm4 = vcmp.lt.f32.partialorder %v1120_v10, 0.0004427343  ;;  %v1100_v43 = vadd.f32 1.0, %v1099_v12  ;;  %v1144_v38 = vmul.f32 -0.5, %v2331_v60 }
 0x283   :  { %v1766_v9 = vpop.eup %1765  ;;  %v1123_v13 = vadd.f32 1.0, %v2335_v1  ;;  %v1147_v26 = vand.u32 2147483647, %v2331_v60  ;;  %vm2373_vm5 = vcmp.lt.f32.partialorder %v1102_v23, 0.0004427343  ;;  %v1126_v56 = vmul.f32 -0.5, %v2335_v1 }
 0x284   :  { %1785 = vlog2.f32 %v1141_v8  ;;  %v2351_v18 = vpop.eup %1767  ;;  %v2358_v34 = vmul.f32 2.0, %v1766_v9  ;;  %v1119_v63 = vmul.f32 %v2312_v39, %v1118_v32  ;;  %v1002_v5 = vsub.f32 0.0, %v970_v44 }
 0x285   :  { %1787 = vlog2.f32 %v1123_v13  ;;  %v1150_v21 = vadd.f32 1.0, %v2351_v18  ;;  %v2380_v7 = vadd.f32 %v2254_v29, %v769_v47  ;;  %v1101_v12 = vmul.f32 %v2318_v45, %v1100_v43 }
 0x286   :  { %v2361_v35 = vpop.eup %1769  ;;  %1789 = vpow2.f32 %v1043_v14  ;;  %v1129_v13 = vand.u32 2147483647, %v2335_v1  ;;  %v1701_v14 = vpop.f32.mrf.mxu0  ;;  %vm2392_vm6 = vcmp.lt.f32.partialorder %v1147_v26, 0.0004427343  ;;  %v1153_v45 = vmul.f32 -0.5, %v2351_v18 }
 0x287   :  { %1791 = vlog2.f32 %v1150_v21  ;;  %v1132_v0 = vadd.f32 1.0, %v2361_v35  ;;  %v1045_v21 = vmul.f32 1.442695, %v1002_v5  ;;  %v968_v43 = vand.u32 2147483647, %v2380_v7 }
 0x288   :  { %v1772_v48 = vpop.eup %1771  ;;  %1793 = vpow2.f32 %v1039_v2  ;;  %v1145_v2 = vadd.f32 1.0, %v1144_v38  ;;  %vm2405_vm7 = vcmp.lt.f32.partialorder %v1129_v13, 0.0004427343  ;;  %v2410_v26 = vadd.f32 %v1701_v14, %v2254_v29 }
 0x289   :  { %v2371_v51 = vpop.eup %1773  ;;  %v1107_v53 = vmul.f32 0.6931472, %v1772_v48  ;;  %1795 = vlog2.f32 %v1132_v0  ;;  %v782_v0 = vpop.f32.mrf.mxu0 }
 0x28a   :  { %v1776_v61 = vpop.eup %1775  ;;  %1797 = vpow2.f32 %v1045_v21 }
 0x28b   :  { %v2382_v8 = vpop.eup %1777  ;;  %v1113_v9 = vsel %vm2337_vm1, %v1110_v15, %v1107_v53  ;;  %v1089_v10 = vmul.f32 0.6931472, %v1776_v61  ;;  %v1127_v15 = vadd.f32 1.0, %v1126_v56  ;;  %v1135_v53 = vmul.f32 -0.5, %v2361_v35  ;;  %v1702_v54 = vpop.f32.mrf.mxu0 }
 0x28c   :  { %v2388_v23 = vpop.eup %1779  ;;  %v1377_v39 = vadd.f32 %v1113_v9, %v929_v25  ;;  %v1156_v9 = vand.u32 2147483647, %v2351_v18  ;;  %v2471_v3 = vadd.f32 %v1702_v54, %v2254_v29 }
 0x28d   :  { %v1782_v44 = vpop.eup %1781  ;;  %v1095_v4 = vsel %vm2353_vm3, %v1092_v31, %v1089_v10  ;;  %v1000_v31 = vsub.f32 0.0, %v968_v43 }
 0x28e   :  { %v1784_v47 = vpop.eup %1783  ;;  %v1410_v40 = vsel %vm1407_vm2, %v2314_v41, %v1377_v39  ;;  %v1375_v25 = vadd.f32 %v1095_v4, %v927_v27  ;;  %v1116_v48 = vmul.f32 0.6931472, %v1782_v44  ;;  %v1146_v27 = vmul.f32 %v2331_v60, %v1145_v2 }
 0x28f   :  { %1442 = vst [vmem:[#allocation2 + $0x10] sm:$0xff] %v1410_v40  ;;  %v1098_v38 = vmul.f32 0.6931472, %v1784_v47  ;;  %v1041_v10 = vmul.f32 1.442695, %v1000_v31  ;;  %v1136_v39 = vadd.f32 1.0, %v1135_v53  ;;  %v785_v40 = vpop.f32.mrf.mxu0 }
 0x290   :  { %v1408_v41 = vsel %vm1407_vm2, %v2322_v50, %v1375_v25  ;;  %v1122_v42 = vsel %vm2363_vm4, %v1119_v63, %v1116_v48  ;;  %v1154_v63 = vadd.f32 1.0, %v1153_v45  ;;  %v973_v60 = vand.u32 2147483647, %v2410_v26 }
 0x291   :  { %v1786_v56 = vpop.eup %1785  ;;  %1440 = vst [vmem:[#allocation2] sm:$0xff] %v1408_v41  ;;  %v1378_v61 = vadd.f32 %v1122_v42, %v930_v28  ;;  %v1104_v5 = vsel %vm2373_vm5, %v1101_v12, %v1098_v38  ;;  %v1128_v28 = vmul.f32 %v2335_v1, %v1127_v15  ;;  %1799 = vpow2.f32 %v1041_v10 }
 0x292   :  { %v1788_v13 = vpop.eup %1787  ;;  %v1376_v50 = vadd.f32 %v1104_v5, %v928_v30  ;;  %v1143_v36 = vmul.f32 0.6931472, %v1786_v56  ;;  %v1005_v2 = vsub.f32 0.0, %v973_v60  ;;  %v1138_v44 = vand.u32 2147483647, %v2361_v35 }
 0x293   :  { %v1411_v14 = vsel %vm1407_vm2, %v2326_v57, %v1378_v61  ;;  %v1125_v46 = vmul.f32 0.6931472, %v1788_v13  ;;  %v2431_v12 = vpop.eup %1789  ;;  %v1155_v45 = vmul.f32 %v2351_v18, %v1154_v63  ;;  %vm1157_vm8 = vcmp.lt.f32.partialorder %v1156_v9, 0.0004427343 }
 0x294   :  { %1443 = vst [vmem:[#allocation2 + $0x18] sm:$0xff] %v1411_v14  ;;  %v1409_v49 = vsel %vm1407_vm2, %v2333_v62, %v1376_v50  ;;  %v1149_v30 = vsel %vm2392_vm6, %v1146_v27, %v1143_v36  ;;  %v1792_v21 = vpop.eup %1791  ;;  %v1177_v4 = vadd.f32 1.0, %v2431_v12  ;;  %v1051_v43 = vmul.f32 1.442695, %v1005_v2 }
 0x295   :  { %1441 = vst [vmem:[#allocation2 + $0x8] sm:$0xff] %v1409_v49  ;;  %v1381_v57 = vadd.f32 %v1149_v30, %v933_v33  ;;  %v1131_v1 = vsel %vm2405_vm7, %v1128_v28, %v1125_v46  ;;  %v2444_v15 = vpop.eup %1793  ;;  %v1152_v32 = vmul.f32 0.6931472, %v1792_v21  ;;  %v1137_v18 = vmul.f32 %v2361_v35, %v1136_v39 }
 0x296   :  { %v1379_v62 = vadd.f32 %v1131_v1, %v931_v20  ;;  %v1796_v47 = vpop.eup %1795  ;;  %1801 = vlog2.f32 %v1177_v4  ;;  %v1159_v33 = vadd.f32 1.0, %v2444_v15  ;;  %vm1139_vm9 = vcmp.lt.f32.partialorder %v1138_v44, 0.0004427343 }
 0x297   :  { %v1414_v55 = vsel %vm1407_vm2, %v2347_v16, %v1381_v57  ;;  %v1158_v20 = vsel %vm1157_vm8, %v1155_v45, %v1152_v32  ;;  %v1134_v25 = vmul.f32 0.6931472, %v1796_v47  ;;  %v2460_v16 = vadd.f32 %v2254_v29, %v782_v0  ;;  %v2462_v22 = vpop.eup %1797 }
 0x298   :  { %1446 = vst [vmem:[#allocation2 + $0x30] sm:$0xff] %v1414_v55  ;;  %v1412_v58 = vsel %vm1407_vm2, %v2349_v17, %v1379_v62  ;;  %v1382_v48 = vadd.f32 %v1158_v20, %v934_v37  ;;  %1803 = vlog2.f32 %v1159_v33  ;;  %v900_v31 = vmul.f32 2.0, %v2371_v51  ;;  %v1705_v37 = vpop.f32.mrf.mxu0 }
 0x299   :  { %1444 = vst [vmem:[#allocation2 + $0x20] sm:$0xff] %v1412_v58  ;;  %v1140_v38 = vsel %vm1139_vm9, %v1137_v18, %v1134_v25  ;;  %1805 = vpow2.f32 %v1051_v43  ;;  %v1186_v0 = vadd.f32 1.0, %v2462_v22  ;;  %v2475_v41 = vadd.f32 %v2254_v29, %v785_v40 }
 0x29a   :  { %v1415_v17 = vsel %vm1407_vm2, %v2358_v34, %v1382_v48  ;;  %v1380_v35 = vadd.f32 %v1140_v38, %v932_v52  ;;  %v1180_v34 = vmul.f32 -0.5, %v2431_v12  ;;  %1807 = vtanh.f32 %v2329_v59  ;;  %v798_v9 = vpop.f32.mrf.mxu0 }
 0x29b   :  { %1447 = vst [vmem:[#allocation2 + $0x38] sm:$0xff] %v1415_v17  ;;  %v971_v6 = vand.u32 2147483647, %v2460_v16  ;;  %v905_v52 = vmul.f32 2.0, %v2382_v8  ;;  %v937_v51 = vmax.f32 %v2296_v19, 0.0  ;;  %v935_v27 = vmax.f32 %v2302_v11, 0.0 }
 0x29c   :  { %v1413_v42 = vsel %vm1407_vm2, %v900_v31, %v1380_v35  ;;  %1809 = vlog2.f32 %v1186_v0  ;;  %v1183_v53 = vand.u32 2147483647, %v2431_v12  ;;  %v1162_v56 = vmul.f32 -0.5, %v2444_v15  ;;  %v1706_v54 = vpop.f32.mrf.mxu0 }
 0x29d   :  { %1445 = vst [vmem:[#allocation2 + $0x28] sm:$0xff] %v1413_v42  ;;  %v1003_v61 = vsub.f32 0.0, %v971_v6  ;;  %v974_v5 = vand.u32 2147483647, %v2471_v3  ;;  %v903_v13 = vmul.f32 2.0, %v2388_v23  ;;  %1811 = vtanh.f32 %v2380_v7 }
 0x29e   :  { %v2488_v10 = vpop.eup %1799  ;;  %v972_v8 = vand.u32 2147483647, %v2475_v41  ;;  %v2494_v19 = vadd.f32 %v1705_v37, %v2254_v29  ;;  %v1181_v11 = vadd.f32 1.0, %v1180_v34  ;;  %1813 = vtanh.f32 %v2410_v26  ;;  %v801_v55 = vpop.f32.mrf.mxu0 }
 0x29f   :  { %v1168_v50 = vadd.f32 1.0, %v2488_v10  ;;  %v1047_v36 = vmul.f32 1.442695, %v1003_v61  ;;  %v1165_v63 = vand.u32 2147483647, %v2444_v15  ;;  %1815 = vtanh.f32 %v2460_v16 }
 0x2a0   :  { %v1006_v60 = vsub.f32 0.0, %v974_v5  ;;  %v1004_v14 = vsub.f32 0.0, %v972_v8  ;;  %vm2500_vm10 = vcmp.lt.f32.partialorder %v1183_v53, 0.0004427343  ;;  %v1163_v46 = vadd.f32 1.0, %v1162_v56  ;;  %v1709_v5 = vpop.f32.mrf.mxu0 }
 0x2a1   :  { %v1189_v28 = vmul.f32 -0.5, %v2462_v22  ;;  %1817 = vlog2.f32 %v1168_v50  ;;  %v977_v2 = vand.u32 2147483647, %v2494_v19  ;;  %v1182_v57 = vmul.f32 %v2431_v12, %v1181_v11 }
 0x2a2   :  { %1819 = vpow2.f32 %v1047_v36  ;;  %v1053_v30 = vmul.f32 1.442695, %v1006_v60  ;;  %v1049_v39 = vmul.f32 1.442695, %v1004_v14  ;;  %v2509_v1 = vadd.f32 %v2254_v29, %v798_v9 }
 0x2a3   :  { %v1802_v49 = vpop.eup %1801  ;;  %1821 = vtanh.f32 %v2471_v3  ;;  %vm2511_vm11 = vcmp.lt.f32.partialorder %v1165_v63, 0.0004427343  ;;  %v1192_v62 = vand.u32 2147483647, %v2462_v22  ;;  %v1009_v32 = vsub.f32 0.0, %v977_v2 }
 0x2a4   :  { %v1179_v21 = vmul.f32 0.6931472, %v1802_v49  ;;  %1823 = vpow2.f32 %v1053_v30  ;;  %v1164_v47 = vmul.f32 %v2444_v15, %v1163_v46  ;;  %v1190_v40 = vadd.f32 1.0, %v1189_v28 }
 0x2a5   :  { %v1804_v44 = vpop.eup %1803  ;;  %1825 = vpow2.f32 %v1049_v39  ;;  %v1171_v58 = vmul.f32 -0.5, %v2488_v10  ;;  %v1059_v18 = vmul.f32 1.442695, %v1009_v32  ;;  %v975_v48 = vand.u32 2147483647, %v2509_v1 }
 0x2a6   :  { %v2516_v45 = vpop.eup %1805  ;;  %v1185_v43 = vsel %vm2500_vm10, %v1182_v57, %v1179_v21  ;;  %v1161_v12 = vmul.f32 0.6931472, %v1804_v44  ;;  %v2527_v38 = vadd.f32 %v1706_v54, %v2254_v29  ;;  %v2532_v35 = vadd.f32 %v2254_v29, %v801_v55 }
 0x2a7   :  { %v1385_v33 = vadd.f32 %v1185_v43, %v937_v51  ;;  %v1213_v20 = vadd.f32 1.0, %v2516_v45  ;;  %v1808_v17 = vpop.eup %1807  ;;  %v938_v0 = vmax.f32 %v2329_v59, 0.0  ;;  %v1007_v42 = vsub.f32 0.0, %v975_v48 }
 0x2a8   :  { %v1167_v25 = vsel %vm2511_vm11, %v1164_v47, %v1161_v12  ;;  %v1191_v51 = vmul.f32 %v2462_v22, %v1190_v40  ;;  %vm1193_vm12 = vcmp.lt.f32.partialorder %v1192_v62, 0.0004427343  ;;  %v978_v61 = vand.u32 2147483647, %v2527_v38 }
 0x2a9   :  { %v1418_v15 = vsel %vm1407_vm2, %v905_v52, %v1385_v33  ;;  %v1383_v31 = vadd.f32 %v1167_v25, %v935_v27  ;;  %1827 = vlog2.f32 %v1213_v20  ;;  %v1810_v37 = vpop.eup %1809  ;;  %v906_v52 = vmul.f32 2.0, %v1808_v17  ;;  %v814_v33 = vpop.f32.mrf.mxu0 }
 0x2aa   :  { %1450 = vst [vmem:[#allocation2 + $0x50] sm:$0xff] %v1418_v15  ;;  %1829 = vpow2.f32 %v1059_v18  ;;  %v1188_v6 = vmul.f32 0.6931472, %v1810_v37  ;;  %v1812_v53 = vpop.eup %1811  ;;  %v1172_v27 = vadd.f32 1.0, %v1171_v58  ;;  %v1055_v56 = vmul.f32 1.442695, %v1007_v42 }
 0x2ab   :  { %v1416_v34 = vsel %vm1407_vm2, %v903_v13, %v1383_v31  ;;  %v1814_v9 = vpop.eup %1813  ;;  %v1174_v59 = vand.u32 2147483647, %v2488_v10  ;;  %1831 = vtanh.f32 %v2475_v41  ;;  %v976_v13 = vand.u32 2147483647, %v2532_v35 }
 0x2ac   :  { %1448 = vst [vmem:[#allocation2 + $0x40] sm:$0xff] %v1416_v34  ;;  %v1194_v8 = vsel %vm1193_vm12, %v1191_v51, %v1188_v6  ;;  %v1816_v11 = vpop.eup %1815  ;;  %v1216_v22 = vmul.f32 -0.5, %v2516_v45  ;;  %1833 = vpow2.f32 %v1055_v56  ;;  %v1010_v36 = vsub.f32 0.0, %v978_v61 }
 0x2ad   :  { %v1386_v50 = vadd.f32 %v1194_v8, %v938_v0  ;;  %v936_v60 = vmax.f32 %v2380_v7, 0.0  ;;  %v941_v14 = vmax.f32 %v2410_v26, 0.0  ;;  %v2546_v23 = vadd.f32 %v1709_v5, %v2254_v29 }
 0x2ae   :  { %v1818_v63 = vpop.eup %1817  ;;  %v1173_v49 = vmul.f32 %v2488_v10, %v1172_v27  ;;  %v1061_v30 = vmul.f32 1.442695, %v1010_v36  ;;  %vm1175_vm13 = vcmp.lt.f32.partialorder %v1174_v59, 0.0004427343  ;;  %v939_v2 = vmax.f32 %v2460_v16, 0.0 }
 0x2af   :  { %v2548_v46 = vpop.eup %1819  ;;  %v1419_v28 = vsel %vm1407_vm2, %v906_v52, %v1386_v50  ;;  %v1170_v54 = vmul.f32 0.6931472, %v1818_v63  ;;  %v1008_v26 = vsub.f32 0.0, %v976_v13  ;;  %v904_v57 = vmul.f32 2.0, %v1812_v53 }
 0x2b0   :  { %v1822_v39 = vpop.eup %1821  ;;  %1451 = vst [vmem:[#allocation2 + $0x58] sm:$0xff] %v1419_v28  ;;  %v1195_v7 = vadd.f32 1.0, %v2548_v46  ;;  %v1217_v4 = vadd.f32 1.0, %v1216_v22  ;;  %1835 = vpow2.f32 %v1061_v30  ;;  %v942_v10 = vmax.f32 %v2471_v3, 0.0 }
 0x2b1   :  { %v2555_v21 = vpop.eup %1823  ;;  %v1176_v44 = vsel %vm1175_vm13, %v1173_v49, %v1170_v54  ;;  %v981_v43 = vand.u32 2147483647, %v2546_v23  ;;  %v1219_v12 = vand.u32 2147483647, %v2516_v45  ;;  %v909_v58 = vmul.f32 2.0, %v1814_v9 }
 0x2b2   :  { %v2557_v62 = vpop.eup %1825  ;;  %v1384_v32 = vadd.f32 %v1176_v44, %v936_v60  ;;  %1837 = vlog2.f32 %v1195_v7  ;;  %v1222_v47 = vadd.f32 1.0, %v2555_v21  ;;  %v1057_v20 = vmul.f32 1.442695, %v1008_v26 }
 0x2b3   :  { %v1204_v55 = vadd.f32 1.0, %v2557_v62  ;;  %1839 = vtanh.f32 %v2494_v19  ;;  %v1218_v18 = vmul.f32 %v2516_v45, %v1217_v4  ;;  %v2569_v48 = vmul.f32 2.0, %v1816_v11  ;;  %v1710_v45 = vpop.f32.mrf.mxu0 }
 0x2b4   :  { %v1417_v40 = vsel %vm1407_vm2, %v904_v57, %v1384_v32  ;;  %1841 = vtanh.f32 %v2509_v1  ;;  %v940_v17 = vmax.f32 %v2475_v41, 0.0  ;;  %v1013_v37 = vsub.f32 0.0, %v981_v43 }
 0x2b5   :  { %1449 = vst [vmem:[#allocation2 + $0x48] sm:$0xff] %v1417_v40  ;;  %1843 = vlog2.f32 %v1222_v47  ;;  %v2575_v0 = vadd.f32 %v2254_v29, %v814_v33  ;;  %vm1220_vm14 = vcmp.lt.f32.partialorder %v1219_v12, 0.0004427343  ;;  %v1198_v42 = vmul.f32 -0.5, %v2548_v46  ;;  %v817_v36 = vpop.f32.mrf.mxu0 }
 0x2b6   :  { %v1828_v25 = vpop.eup %1827  ;;  %1845 = vlog2.f32 %v1204_v55  ;;  %v945_v51 = vmax.f32 %v2494_v19, 0.0  ;;  %v943_v53 = vmax.f32 %v2509_v1, 0.0  ;;  %v1201_v56 = vand.u32 2147483647, %v2548_v46 }
 0x2b7   :  { %v2572_v15 = vpop.eup %1829  ;;  %v1215_v31 = vmul.f32 0.6931472, %v1828_v25  ;;  %1847 = vtanh.f32 %v2527_v38  ;;  %v2583_v61 = vmul.f32 2.0, %v1822_v39  ;;  %v1225_v9 = vmul.f32 -0.5, %v2555_v21  ;;  %v1713_v40 = vpop.f32.mrf.mxu0 }
 0x2b8   :  { %v1249_v34 = vadd.f32 1.0, %v2572_v15  ;;  %1849 = vpow2.f32 %v1057_v20  ;;  %v1832_v52 = vpop.eup %1831  ;;  %v1067_v8 = vmul.f32 1.442695, %v1013_v37  ;;  %v979_v59 = vand.u32 2147483647, %v2575_v0 }
 0x2b9   :  { %v1221_v6 = vsel %vm1220_vm14, %v1218_v18, %v1215_v31  ;;  %v2585_v5 = vpop.eup %1833  ;;  %v1199_v11 = vadd.f32 1.0, %v1198_v42  ;;  %v1207_v50 = vmul.f32 -0.5, %v2557_v62  ;;  %v2594_v63 = vmul.f32 2.0, %v1832_v52 }
 0x2ba   :  { %v1389_v27 = vadd.f32 %v1221_v6, %v941_v14  ;;  %1851 = vlog2.f32 %v1249_v34  ;;  %v1231_v22 = vadd.f32 1.0, %v2585_v5  ;;  %v1252_v60 = vmul.f32 -0.5, %v2572_v15 }
 0x2bb   :  { %1853 = vtanh.f32 %v2532_v35  ;;  %v1011_v14 = vsub.f32 0.0, %v979_v59  ;;  %v1228_v28 = vand.u32 2147483647, %v2555_v21  ;;  %v1210_v54 = vand.u32 2147483647, %v2557_v62 }
 0x2bc   :  { %v1422_v13 = vsel %vm1407_vm2, %v909_v58, %v1389_v27  ;;  %1855 = vpow2.f32 %v1067_v8  ;;  %v2600_v49 = vadd.f32 %v1710_v45, %v2254_v29  ;;  %v1226_v39 = vadd.f32 1.0, %v1225_v9 }
 0x2bd   :  { %1454 = vst [vmem:[#allocation2 + $0x70] sm:$0xff] %v1422_v13  ;;  %1857 = vlog2.f32 %v1231_v22  ;;  %v2602_v30 = vpop.eup %1835  ;;  %v1063_v7 = vmul.f32 1.442695, %v1011_v14  ;;  %v2606_v26 = vadd.f32 %v2254_v29, %v817_v36  ;;  %v1200_v44 = vmul.f32 %v2548_v46, %v1199_v11 }
 0x2be   :  { %1859 = vtanh.f32 %v2546_v23  ;;  %vm2609_vm15 = vcmp.lt.f32.partialorder %v1201_v56, 0.0004427343  ;;  %v1208_v32 = vadd.f32 1.0, %v1207_v50  ;;  %v1258_v43 = vadd.f32 1.0, %v2602_v30 }
 0x2bf   :  { %v1838_v57 = vpop.eup %1837  ;;  %v1253_v55 = vadd.f32 1.0, %v1252_v60  ;;  %1861 = vpow2.f32 %v1063_v7  ;;  %v982_v33 = vand.u32 2147483647, %v2600_v49  ;;  %vm2617_vm0 = vcmp.lt.f32.partialorder %v1228_v28, 0.0004427343  ;;  %v830_v7 = vpop.f32.mrf.mxu0 }
 0x2c0   :  { %v1840_v12 = vpop.eup %1839  ;;  %v1197_v47 = vmul.f32 0.6931472, %v1838_v57  ;;  %vm2621_vm1 = vcmp.lt.f32.partialorder %v1210_v54, 0.0004427343  ;;  %v1234_v25 = vmul.f32 -0.5, %v2585_v5  ;;  %1863 = vlog2.f32 %v1258_v43 }
 0x2c1   :  { %v2615_v58 = vpop.eup %1841  ;;  %v1227_v37 = vmul.f32 %v2555_v21, %v1226_v39  ;;  %v1014_v42 = vsub.f32 0.0, %v982_v33  ;;  %v980_v34 = vand.u32 2147483647, %v2606_v26  ;;  %v1255_v27 = vand.u32 2147483647, %v2572_v15 }
 0x2c2   :  { %v1844_v18 = vpop.eup %1843  ;;  %v1203_v31 = vsel %vm2609_vm15, %v1200_v44, %v1197_v47  ;;  %v2634_v56 = vadd.f32 %v1713_v40, %v2254_v29  ;;  %v1209_v59 = vmul.f32 %v2557_v62, %v1208_v32  ;;  %v1254_v21 = vmul.f32 %v2572_v15, %v1253_v55 }
 0x2c3   :  { %v1846_v45 = vpop.eup %1845  ;;  %v1387_v6 = vadd.f32 %v1203_v31, %v939_v2  ;;  %v1224_v52 = vmul.f32 0.6931472, %v1844_v18  ;;  %v1069_v13 = vmul.f32 1.442695, %v1014_v42  ;;  %v1235_v50 = vadd.f32 1.0, %v1234_v25 }
 0x2c4   :  { %v2636_v9 = vpop.eup %1847  ;;  %v1206_v8 = vmul.f32 0.6931472, %v1846_v45  ;;  %v1012_v22 = vsub.f32 0.0, %v980_v34  ;;  %v1261_v15 = vmul.f32 -0.5, %v2602_v30  ;;  %v985_v39 = vand.u32 2147483647, %v2634_v56 }
 0x2c5   :  { %v2640_v11 = vpop.eup %1849  ;;  %v1420_v16 = vsel %vm1407_vm2, %v2569_v48, %v1387_v6  ;;  %v1230_v2 = vsel %vm2617_vm0, %v1227_v37, %v1224_v52  ;;  %1865 = vpow2.f32 %v1069_v13  ;;  %vm1256_vm3 = vcmp.lt.f32.partialorder %v1255_v27, 0.0004427343  ;;  %v2697_v13 = vld [vmem:[%s2846_s6] ss:$0 sm:$0xff]  ;;  %s1956_s6 = smov [#allocation2]  }
 0x2c6   :  { %1452 = vst [vmem:[#allocation2 + $0x60] sm:$0xff] %v1420_v16  ;;  %v1390_v60 = vadd.f32 %v1230_v2, %v942_v10  ;;  %v1212_v62 = vsel %vm2621_vm1, %v1209_v59, %v1206_v8  ;;  %v1240_v14 = vadd.f32 1.0, %v2640_v11  ;;  %v1237_v10 = vand.u32 2147483647, %v2585_v5  ;;  %s1477_s29 = sshll.u32 %s1956_s6, 4  ;;  %s1478_s29 = int_to_ptr.vmem [resolvable:$true] %s1477_s29 }
 0x2c7   :  { %v1852_v36 = vpop.eup %1851  ;;  %v1388_v48 = vadd.f32 %v1212_v62, %v940_v17  ;;  %v913_v17 = vmul.f32 2.0, %v1840_v12  ;;  %v1065_v4 = vmul.f32 1.442695, %v1012_v22  ;;  %v2672_v55 = vadd.f32 %v2254_v29, %v830_v7  ;;  %s1934_s30 = scalar_lea.vmem %s1478_s29, 4096  ;;  %p1939_p1 = scmp.lt.s32.totalorder %s1478_s29, %s1478_s29 }
 0x2c8   :  { %v2653_v28 = vpop.eup %1853  ;;  %v1251_v54 = vmul.f32 0.6931472, %v1852_v36  ;;  %v1423_v3 = vsel %vm1407_vm2, %v2583_v61, %v1390_v60  ;;  %1867 = vlog2.f32 %v1240_v14  ;;  %v1236_v61 = vmul.f32 %v2585_v5, %v1235_v50  ;;  %p1935_p0 = scmp.ne.s32.totalorder %s1478_s29, %s1934_s30  ;;  %p1940_p2 = scmp.lt.s32.totalorder %s1934_s30, %s1934_s30 }
 0x2c9   :  { %v2662_v57 = vpop.eup %1855  ;;  %1455 = vst [vmem:[#allocation2 + $0x78] sm:$0xff] %v1423_v3  ;;  %v1421_v41 = vsel %vm1407_vm2, %v2594_v63, %v1388_v48  ;;  %v1262_v20 = vadd.f32 1.0, %v1261_v15  ;;  %1869 = vpow2.f32 %v1065_v4  ;;  %v1017_v63 = vsub.f32 0.0, %v985_v39 }
 0x2ca   :  { %v1257_v44 = vsel %vm1256_vm3, %v1254_v21, %v1251_v54  ;;  %v1858_v32 = vpop.eup %1857  ;;  %1453 = vst [vmem:[#allocation2 + $0x68] sm:$0xff] %v1421_v41  ;;  %v1285_v47 = vadd.f32 1.0, %v2662_v57  ;;  %vm1238_vm4 = vcmp.lt.f32.partialorder %v1237_v10, 0.0004427343  ;;  %v1264_v19 = vand.u32 2147483647, %v2602_v30  ;;  %p1941_p3 = por %p1940_p2, %p1939_p1 }
 0x2cb   :  { %v1393_v43 = vadd.f32 %v1257_v44, %v945_v51  ;;  %v2674_v33 = vpop.eup %1859  ;;  %v1233_v40 = vmul.f32 0.6931472, %v1858_v32  ;;  %v1714_v51 = vpop.f32.mrf.mxu0  ;;  %v911_v29 = vmul.f32 2.0, %v2615_v58  ;;  %v1075_v25 = vmul.f32 1.442695, %v1017_v63 }
 0x2cc   :  { %1871 = vlog2.f32 %v1285_v47  ;;  %v2679_v5 = vpop.eup %1861  ;;  %v1243_v37 = vmul.f32 -0.5, %v2640_v11  ;;  %v1263_v45 = vmul.f32 %v2602_v30, %v1262_v20  ;;  %v983_v6 = vand.u32 2147483647, %v2672_v55  ;;  %p1942_p4 = pnand %p1941_p3, %p1935_p0 }
 0x2cd   :  { %v1426_v12 = vsel %vm1407_vm2, %v913_v17, %v1393_v43  ;;  %v1239_v46 = vsel %vm1238_vm4, %v1236_v61, %v1233_v40  ;;  %v1864_v18 = vpop.eup %1863  ;;  %1873 = vtanh.f32 %v2575_v0  ;;  %v1267_v42 = vadd.f32 1.0, %v2679_v5  ;;  %v833_v1 = vpop.f32.mrf.mxu0 }
 0x2ce   :  { %1458 = vst [vmem:[#allocation2 + $0x90] sm:$0xff] %v1426_v12  ;;  %v1391_v31 = vadd.f32 %v1239_v46, %v943_v53  ;;  %v1260_v34 = vmul.f32 0.6931472, %v1864_v18  ;;  %1875 = vpow2.f32 %v1075_v25  ;;  %v946_v52 = vmax.f32 %v2527_v38, 0.0 }
 0x2cf   :  { %vm1265_vm5 = vcmp.lt.f32.partialorder %v1264_v19, 0.0004427343  ;;  %1877 = vlog2.f32 %v1267_v42  ;;  %v1288_v27 = vmul.f32 -0.5, %v2662_v57  ;;  %v1015_v8 = vsub.f32 0.0, %v983_v6  ;;  %v1717_v15 = vpop.f32.mrf.mxu0 }
 0x2d0   :  { %v1424_v58 = vsel %vm1407_vm2, %v911_v29, %v1391_v31  ;;  %v1266_v53 = vsel %vm1265_vm5, %v1263_v45, %v1260_v34  ;;  %v914_v59 = vmul.f32 2.0, %v2636_v9  ;;  %v1244_v30 = vadd.f32 1.0, %v1243_v37 }
 0x2d1   :  { %1456 = vst [vmem:[#allocation2 + $0x80] sm:$0xff] %v1424_v58  ;;  %v1394_v21 = vadd.f32 %v1266_v53, %v946_v52  ;;  %v2700_v16 = vadd.f32 %v2697_v13, %v1714_v51  ;;  %v944_v38 = vmax.f32 %v2532_v35, 0.0  ;;  %v1246_v2 = vand.u32 2147483647, %v2640_v11  ;;  %v846_v43 = vpop.f32.mrf.mxu0 }
 0x2d2   :  { %v1071_v50 = vmul.f32 1.442695, %v1015_v8  ;;  %v2705_v22 = vadd.f32 %v2697_v13, %v833_v1  ;;  %v2707_v36 = vpop.eup %1865  ;;  %v949_v60 = vmax.f32 %v2546_v23, 0.0  ;;  %1879 = vtanh.f32 %v2600_v49 }
 0x2d3   :  { %v1427_v9 = vsel %vm1407_vm2, %v914_v59, %v1394_v21  ;;  %v986_v62 = vand.u32 2147483647, %v2700_v16  ;;  %v912_v35 = vmul.f32 2.0, %v2653_v28  ;;  %v1289_v48 = vadd.f32 1.0, %v1288_v27  ;;  %v1718_v18 = vpop.f32.mrf.mxu0 }
 0x2d4   :  { %1459 = vst [vmem:[#allocation2 + $0x98] sm:$0xff] %v1427_v9  ;;  %v1294_v54 = vadd.f32 1.0, %v2707_v36  ;;  %1881 = vpow2.f32 %v1071_v50  ;;  %v1245_v7 = vmul.f32 %v2640_v11, %v1244_v30  ;;  %v1270_v3 = vmul.f32 -0.5, %v2679_v5 }
 0x2d5   :  { %v1868_v14 = vpop.eup %1867  ;;  %v1018_v10 = vsub.f32 0.0, %v986_v62  ;;  %vm1247_vm6 = vcmp.lt.f32.partialorder %v1246_v2, 0.0004427343  ;;  %v1291_v23 = vand.u32 2147483647, %v2662_v57  ;;  %v917_v28 = vmul.f32 2.0, %v2674_v33  ;;  %v849_v30 = vpop.f32.mrf.mxu0 }
 0x2d6   :  { %v1242_v39 = vmul.f32 0.6931472, %v1868_v14  ;;  %1883 = vlog2.f32 %v1294_v54  ;;  %v984_v41 = vand.u32 2147483647, %v2705_v22  ;;  %v2720_v17 = vpop.eup %1869  ;;  %v2724_v32 = vadd.f32 %v2697_v13, %v1717_v15 }
 0x2d7   :  { %v1077_v4 = vmul.f32 1.442695, %v1018_v10  ;;  %v1290_v47 = vmul.f32 %v2662_v57, %v1289_v48  ;;  %1885 = vtanh.f32 %v2606_v26  ;;  %v1276_v40 = vadd.f32 1.0, %v2720_v17 }
 0x2d8   :  { %v1248_v44 = vsel %vm1247_vm6, %v1245_v7, %v1242_v39  ;;  %v1271_v63 = vadd.f32 1.0, %v1270_v3  ;;  %v1016_v12 = vsub.f32 0.0, %v984_v41  ;;  %vm1292_vm7 = vcmp.lt.f32.partialorder %v1291_v23, 0.0004427343 }
 0x2d9   :  { %v1872_v11 = vpop.eup %1871  ;;  %v1392_v61 = vadd.f32 %v1248_v44, %v944_v38  ;;  %1887 = vpow2.f32 %v1077_v4  ;;  %v1273_v51 = vand.u32 2147483647, %v2679_v5  ;;  %v989_v25 = vand.u32 2147483647, %v2724_v32 }
 0x2da   :  { %v1287_v20 = vmul.f32 0.6931472, %v1872_v11  ;;  %v1874_v19 = vpop.eup %1873  ;;  %1889 = vlog2.f32 %v1276_v40  ;;  %v1073_v46 = vmul.f32 1.442695, %v1016_v12  ;;  %v1297_v42 = vmul.f32 -0.5, %v2707_v36 }
 0x2db   :  { %v1425_v33 = vsel %vm1407_vm2, %v912_v35, %v1392_v61  ;;  %v2732_v29 = vpop.eup %1875  ;;  %1891 = vtanh.f32 %v2634_v56  ;;  %v2739_v45 = vadd.f32 %v2697_v13, %v846_v43  ;;  %v1272_v58 = vmul.f32 %v2679_v5, %v1271_v63 }
 0x2dc   :  { %1457 = vst [vmem:[#allocation2 + $0x88] sm:$0xff] %v1425_v33  ;;  %v1293_v57 = vsel %vm1292_vm7, %v1290_v47, %v1287_v20  ;;  %v1878_v31 = vpop.eup %1877  ;;  %v1321_v34 = vadd.f32 1.0, %v2732_v29  ;;  %1893 = vpow2.f32 %v1073_v46  ;;  %v1021_v52 = vsub.f32 0.0, %v989_v25 }
 0x2dd   :  { %v1397_v37 = vadd.f32 %v1293_v57, %v949_v60  ;;  %v1269_v6 = vmul.f32 0.6931472, %v1878_v31  ;;  %v947_v53 = vmax.f32 %v2575_v0, 0.0  ;;  %vm1274_vm8 = vcmp.lt.f32.partialorder %v1273_v51, 0.0004427343 }
 0x2de   :  { %1895 = vlog2.f32 %v1321_v34  ;;  %v915_v27 = vmul.f32 2.0, %v1874_v19  ;;  %v1279_v59 = vmul.f32 -0.5, %v2720_v17  ;;  %v1083_v21 = vmul.f32 1.442695, %v1021_v52 }
 0x2df   :  { %v1430_v1 = vsel %vm1407_vm2, %v917_v28, %v1397_v37  ;;  %v1275_v8 = vsel %vm1274_vm8, %v1272_v58, %v1269_v6  ;;  %v1880_v38 = vpop.eup %1879  ;;  %v1298_v50 = vadd.f32 1.0, %v1297_v42  ;;  %v1300_v5 = vand.u32 2147483647, %v2707_v36 }
 0x2e0   :  { %1462 = vst [vmem:[#allocation2 + $0xb0] sm:$0xff] %v1430_v1  ;;  %v1395_v2 = vadd.f32 %v1275_v8, %v947_v53  ;;  %v987_v9 = vand.u32 2147483647, %v2739_v45  ;;  %1897 = vpow2.f32 %v1083_v21  ;;  %v2751_v0 = vadd.f32 %v2697_v13, %v1718_v18 }
 0x2e1   :  { %v2748_v60 = vpop.eup %1881  ;;  %v950_v15 = vmax.f32 %v2600_v49, 0.0  ;;  %v2758_v35 = vadd.f32 %v2697_v13, %v849_v30  ;;  %v948_v54 = vmax.f32 %v2606_v26, 0.0  ;;  %v1280_v39 = vadd.f32 1.0, %v1279_v59 }
 0x2e2   :  { %v1428_v62 = vsel %vm1407_vm2, %v915_v27, %v1395_v2  ;;  %v1303_v14 = vadd.f32 1.0, %v2748_v60  ;;  %v1324_v7 = vmul.f32 -0.5, %v2732_v29  ;;  %v1019_v3 = vsub.f32 0.0, %v987_v9 }
 0x2e3   :  { %v1884_v48 = vpop.eup %1883  ;;  %1460 = vst [vmem:[#allocation2 + $0xa0] sm:$0xff] %v1428_v62  ;;  %v1299_v23 = vmul.f32 %v2707_v36, %v1298_v50  ;;  %vm1301_vm9 = vcmp.lt.f32.partialorder %v1300_v5, 0.0004427343  ;;  %v1282_v49 = vand.u32 2147483647, %v2720_v17  ;;  %v918_v26 = vmul.f32 2.0, %v1880_v38 }
 0x2e4   :  { %v1296_v10 = vmul.f32 0.6931472, %v1884_v48  ;;  %1899 = vlog2.f32 %v1303_v14  ;;  %v1886_v41 = vpop.eup %1885  ;;  %v1079_v13 = vmul.f32 1.442695, %v1019_v3  ;;  %v990_v44 = vand.u32 2147483647, %v2751_v0 }
 0x2e5   :  { %1901 = vtanh.f32 %v2672_v55  ;;  %v988_v43 = vand.u32 2147483647, %v2758_v35  ;;  %v1281_v61 = vmul.f32 %v2720_v17, %v1280_v39  ;;  %v1325_v47 = vadd.f32 1.0, %v1324_v7 }
 0x2e6   :  { %v2766_v28 = vpop.eup %1887  ;;  %v1302_v4 = vsel %vm1301_vm9, %v1299_v23, %v1296_v10  ;;  %1903 = vtanh.f32 %v2700_v16  ;;  %v1022_v12 = vsub.f32 0.0, %v990_v44  ;;  %vm1283_vm10 = vcmp.lt.f32.partialorder %v1282_v49, 0.0004427343 }
 0x2e7   :  { %v1890_v11 = vpop.eup %1889  ;;  %v1398_v36 = vadd.f32 %v1302_v4, %v950_v15  ;;  %v1330_v40 = vadd.f32 1.0, %v2766_v28  ;;  %1905 = vpow2.f32 %v1079_v13  ;;  %v1020_v19 = vsub.f32 0.0, %v988_v43 }
 0x2e8   :  { %v1892_v20 = vpop.eup %1891  ;;  %v1278_v63 = vmul.f32 0.6931472, %v1890_v11  ;;  %v1327_v51 = vand.u32 2147483647, %v2732_v29  ;;  %v1306_v17 = vmul.f32 -0.5, %v2748_v60  ;;  %v916_v37 = vmul.f32 2.0, %v1886_v41 }
 0x2e9   :  { %v1431_v33 = vsel %vm1407_vm2, %v918_v26, %v1398_v36  ;;  %1907 = vlog2.f32 %v1330_v40  ;;  %v2775_v57 = vpop.eup %1893  ;;  %v1085_v25 = vmul.f32 1.442695, %v1022_v12  ;;  %v1081_v18 = vmul.f32 1.442695, %v1020_v19 }
 0x2ea   :  { %1463 = vst [vmem:[#allocation2 + $0xb8] sm:$0xff] %v1431_v33  ;;  %v1284_v46 = vsel %vm1283_vm10, %v1281_v61, %v1278_v63  ;;  %1909 = vtanh.f32 %v2705_v22  ;;  %v1312_v34 = vadd.f32 1.0, %v2775_v57  ;;  %v1326_v58 = vmul.f32 %v2732_v29, %v1325_v47 }
 0x2eb   :  { %v1896_v31 = vpop.eup %1895  ;;  %v1396_v42 = vadd.f32 %v1284_v46, %v948_v54  ;;  %1911 = vpow2.f32 %v1085_v25  ;;  %v953_v1 = vmax.f32 %v2634_v56, 0.0  ;;  %vm1328_vm11 = vcmp.lt.f32.partialorder %v1327_v51, 0.0004427343 }
 0x2ec   :  { %v1323_v6 = vmul.f32 0.6931472, %v1896_v31  ;;  %1913 = vlog2.f32 %v1312_v34  ;;  %v1307_v8 = vadd.f32 1.0, %v1306_v17  ;;  %v1333_v59 = vmul.f32 -0.5, %v2766_v28 }
 0x2ed   :  { %v1429_v52 = vsel %vm1407_vm2, %v916_v37, %v1396_v42  ;;  %v2784_v53 = vpop.eup %1897  ;;  %1915 = vpow2.f32 %v1081_v18  ;;  %v921_v21 = vmul.f32 2.0, %v1892_v20  ;;  %v1309_v29 = vand.u32 2147483647, %v2748_v60 }
 0x2ee   :  { %1461 = vst [vmem:[#allocation2 + $0xa8] sm:$0xff] %v1429_v52  ;;  %v1329_v27 = vsel %vm1328_vm11, %v1326_v58, %v1323_v6  ;;  %v1357_v38 = vadd.f32 1.0, %v2784_v53  ;;  %v1308_v9 = vmul.f32 %v2748_v60, %v1307_v8  ;;  %v1334_v62 = vadd.f32 1.0, %v1333_v59 }
 0x2ef   :  { %v1401_v30 = vadd.f32 %v1329_v27, %v953_v1  ;;  %v951_v14 = vmax.f32 %v2672_v55, 0.0  ;;  %vm1310_vm12 = vcmp.lt.f32.partialorder %v1309_v29, 0.0004427343  ;;  %v1315_v48 = vmul.f32 -0.5, %v2775_v57 }
 0x2f0   :  { %1917 = vlog2.f32 %v1357_v38  ;;  %v1336_v39 = vand.u32 2147483647, %v2766_v28  ;;  %v1335_v41 = vmul.f32 %v2766_v28, %v1334_v62  ;;  %v1318_v60 = vand.u32 2147483647, %v2775_v57 }
 0x2f1   :  { %v1900_v2 = vpop.eup %1899  ;;  %v1434_v56 = vsel %vm1407_vm2, %v921_v21, %v1401_v30  ;;  %1919 = vtanh.f32 %v2724_v32  ;;  %v1316_v44 = vadd.f32 1.0, %v1315_v48  ;;  %v1360_v26 = vmul.f32 -0.5, %v2784_v53 }
 0x2f2   :  { %v1902_v50 = vpop.eup %1901  ;;  %1466 = vst [vmem:[#allocation2 + $0xd0] sm:$0xff] %v1434_v56  ;;  %v1305_v5 = vmul.f32 0.6931472, %v1900_v2  ;;  %v954_v43 = vmax.f32 %v2700_v16, 0.0  ;;  %vm1337_vm13 = vcmp.lt.f32.partialorder %v1336_v39, 0.0004427343 }
 0x2f3   :  { %v1904_v15 = vpop.eup %1903  ;;  %v919_v3 = vmul.f32 2.0, %v1902_v50  ;;  %v952_v40 = vmax.f32 %v2705_v22, 0.0  ;;  %v1317_v19 = vmul.f32 %v2775_v57, %v1316_v44  ;;  %vm1319_vm14 = vcmp.lt.f32.partialorder %v1318_v60, 0.0004427343 }
 0x2f4   :  { %v1311_v54 = vsel %vm1310_vm12, %v1308_v9, %v1305_v5  ;;  %v2796_v7 = vpop.eup %1905  ;;  %v922_v61 = vmul.f32 2.0, %v1904_v15  ;;  %v1361_v33 = vadd.f32 1.0, %v1360_v26  ;;  %v1363_v51 = vand.u32 2147483647, %v2784_v53 }
 0x2f5   :  { %v1399_v10 = vadd.f32 %v1311_v54, %v951_v14  ;;  %v1339_v49 = vadd.f32 1.0, %v2796_v7  ;;  %v1342_v31 = vmul.f32 -0.5, %v2796_v7  ;;  %v957_v6 = vmax.f32 %v2724_v32, 0.0 }
 0x2f6   :  { %v1908_v23 = vpop.eup %1907  ;;  %v1362_v42 = vmul.f32 %v2784_v53, %v1361_v33  ;;  %vm1364_vm15 = vcmp.lt.f32.partialorder %v1363_v51, 0.0004427343  ;;  %v1345_v59 = vand.u32 2147483647, %v2796_v7  ;;  %v955_v56 = vmax.f32 %v2739_v45, 0.0 }
 0x2f7   :  { %v1432_v55 = vsel %vm1407_vm2, %v919_v3, %v1399_v10  ;;  %v1332_v13 = vmul.f32 0.6931472, %v1908_v23  ;;  %v1910_v4 = vpop.eup %1909  ;;  %1921 = vlog2.f32 %v1339_v49  ;;  %v1343_v27 = vadd.f32 1.0, %v1342_v31 }
 0x2f8   :  { %1464 = vst [vmem:[#allocation2 + $0xc0] sm:$0xff] %v1432_v55  ;;  %v1912_v11 = vpop.eup %1911  ;;  %1923 = vtanh.f32 %v2739_v45  ;;  %v920_v25 = vmul.f32 2.0, %v1910_v4  ;;  %vm1346_vm0 = vcmp.lt.f32.partialorder %v1345_v59, 0.0004427343  ;;  %v956_v44 = vmax.f32 %v2758_v35, 0.0 }
 0x2f9   :  { %v1338_v36 = vsel %vm1337_vm13, %v1335_v41, %v1332_v13  ;;  %v1914_v28 = vpop.eup %1913  ;;  %v1366_v20 = vadd.f32 1.0, %v1912_v11  ;;  %v1369_v8 = vmul.f32 -0.5, %v1912_v11  ;;  %v1344_v32 = vmul.f32 %v2796_v7, %v1343_v27 }
 0x2fa   :  { %v1402_v47 = vadd.f32 %v1338_v36, %v954_v43  ;;  %v2807_v63 = vpop.eup %1915  ;;  %v1314_v12 = vmul.f32 0.6931472, %v1914_v28  ;;  %v1372_v50 = vand.u32 2147483647, %v1912_v11  ;;  %v958_v7 = vmax.f32 %v2751_v0, 0.0 }
 0x2fb   :  { %1925 = vlog2.f32 %v1366_v20  ;;  %v1348_v46 = vadd.f32 1.0, %v2807_v63  ;;  %v1351_v53 = vmul.f32 -0.5, %v2807_v63  ;;  %v1370_v2 = vadd.f32 1.0, %v1369_v8 }
 0x2fc   :  { %v1435_v16 = vsel %vm1407_vm2, %v922_v61, %v1402_v47  ;;  %v1320_v17 = vsel %vm1319_vm14, %v1317_v19, %v1314_v12  ;;  %1927 = vtanh.f32 %v2751_v0  ;;  %v1354_v48 = vand.u32 2147483647, %v2807_v63 }
 0x2fd   :  { %1467 = vst [vmem:[#allocation2 + $0xd8] sm:$0xff] %v1435_v16  ;;  %v1918_v22 = vpop.eup %1917  ;;  %v1400_v18 = vadd.f32 %v1320_v17, %v952_v40  ;;  %1929 = vlog2.f32 %v1348_v46  ;;  %v1352_v9 = vadd.f32 1.0, %v1351_v53  ;;  %v1371_v3 = vmul.f32 %v1912_v11, %v1370_v2 }
 0x2fe   :  { %v1920_v57 = vpop.eup %1919  ;;  %v1359_v37 = vmul.f32 0.6931472, %v1918_v22  ;;  %1931 = vtanh.f32 %v2758_v35  ;;  %vm1373_vm1 = vcmp.lt.f32.partialorder %v1372_v50, 0.0004427343  ;;  %vm1355_vm3 = vcmp.lt.f32.partialorder %v1354_v48, 0.0004427343 }
 0x2ff   :  { %v1433_v34 = vsel %vm1407_vm2, %v920_v25, %v1400_v18  ;;  %v925_v52 = vmul.f32 2.0, %v1920_v57  ;;  %v1353_v49 = vmul.f32 %v2807_v63, %v1352_v9 }
 0x300   :  { %1465 = vst [vmem:[#allocation2 + $0xc8] sm:$0xff] %v1433_v34  ;;  %v1365_v58 = vsel %vm1364_vm15, %v1362_v42, %v1359_v37 }
 0x301   :  { %v1405_v1 = vadd.f32 %v1365_v58, %v957_v6 }
 0x303   :  { %v1438_v21 = vsel %vm1407_vm2, %v925_v52, %v1405_v1 }
 0x304   :  { %v1922_v30 = vpop.eup %1921  ;;  %1470 = vst [vmem:[#allocation2 + $0xf0] sm:$0xff] %v1438_v21 }
 0x305   :  { %v1924_v29 = vpop.eup %1923  ;;  %v1341_v38 = vmul.f32 0.6931472, %v1922_v30 }
 0x306   :  { %v923_v15 = vmul.f32 2.0, %v1924_v29 }
 0x307   :  { %v1347_v5 = vsel %vm1346_vm0, %v1344_v32, %v1341_v38 }
 0x308   :  { %v1926_v62 = vpop.eup %1925  ;;  %v1403_v14 = vadd.f32 %v1347_v5, %v955_v56 }
 0x309   :  { %v1928_v54 = vpop.eup %1927  ;;  %v1368_v39 = vmul.f32 0.6931472, %v1926_v62 }
 0x30a   :  { %v1930_v10 = vpop.eup %1929  ;;  %v1436_v23 = vsel %vm1407_vm2, %v923_v15, %v1403_v14  ;;  %v926_v55 = vmul.f32 2.0, %v1928_v54 }
 0x30b   :  { %v1932_v45 = vpop.eup %1931  ;;  %1468 = vst [vmem:[#allocation2 + $0xe0] sm:$0xff] %v1436_v23  ;;  %v1374_v41 = vsel %vm1373_vm1, %v1371_v3, %v1368_v39  ;;  %v1350_v60 = vmul.f32 0.6931472, %v1930_v10 }
 0x30c   :  { %v1406_v13 = vadd.f32 %v1374_v41, %v958_v7  ;;  %v924_v43 = vmul.f32 2.0, %v1932_v45 }
 0x30d   :  { %v1356_v26 = vsel %vm1355_vm3, %v1353_v49, %v1350_v60 }
 0x30e   :  { %v1439_v4 = vsel %vm1407_vm2, %v926_v55, %v1406_v13  ;;  %v1404_v0 = vadd.f32 %v1356_v26, %v956_v44 }
 0x30f   :  { %1471 = vst [vmem:[#allocation2 + $0xf8] sm:$0xff] %v1439_v4 }
 0x310   :  { %v1437_v11 = vsel %vm1407_vm2, %v924_v43, %v1404_v0 }
 0x311   :  { %1469 = vst [vmem:[#allocation2 + $0xe8] sm:$0xff] %v1437_v11 }
 0x312   :  { %1945 = shalt.err (!%p1942_p4)
}
 0x313   :  { %s1957_s8 = smov 128   ;;  %s1958_s0 = smov 8  }
 0x314   :  { %1483 = dma.vmem_to_hbm [thread:$0]  %s1478_s29, 4096, %s2847_s7, [#allocation3], %s1957_s8, %s1957_s8, %s1958_s0  }
 0x315   :  { %1954 = dma.done.wait [#allocation3], 4096  }
 0x316   :  { %1955 = vsyncadd [#allocation3], 4294963200 }
 0x317   :  { %1487 = vsyncpa [#allocation3], 1 }

</bundles_post_ra>
